<compile_context>
chip_gen: v7x
topology: tpu7x:2x2x1
jax: 0.10.0
libtpu: 0.0.40
codegen_flags: <defaults>
</compile_context>

<pallas_src>
import functools

import jax
import jax.numpy as jnp
from jax.experimental import pallas as pl
from jax.experimental.pallas import tpu as pltpu


def _trilinear_kernel(coords_ref, vol_ref, out_ref, *, D, H, W, C):
    """One tile of T query points (on lanes) against the full volume table.

    coords_ref: [3, T]      rows = (x, y, z) query coords in [-1, 1]
    vol_ref:    [C*W, D*H]  vol_table[c*W + x, z*H + y] = volume[c, z, y, x]
    out_ref:    [C, T]      features, points on lanes
    """
    T = coords_ref.shape[1]
    DH = D * H

    def prep(coord, size):
        # align_corners=True unnormalize, padding_mode='border' clamp.
        c = (coord + 1.0) * 0.5 * (size - 1)
        c = jnp.clip(c, 0.0, float(size - 1))
        c0 = jnp.clip(jnp.floor(c), 0.0, float(max(size - 2, 0)))
        return c0.astype(jnp.int32), c - c0          # low corner, frac weight

    x0, tx = prep(coords_ref[0:1, :], W)             # each [1, T]
    y0, ty = prep(coords_ref[1:2, :], H)
    z0, tz = prep(coords_ref[2:3, :], D)

    zero = jnp.zeros((), jnp.float32)

    # ---- Stage 1 (MXU): contract over the (z, y) axis only -----------------
    # wzy[z*H + y, t] = w_z(t, z) * w_y(t, y)   (4 nonzeros per point)
    zy0 = z0 * H + y0                                # [1, T]
    k = jax.lax.broadcasted_iota(jnp.int32, (DH, T), 0)
    wz0, wz1 = 1.0 - tz, tz
    wy0, wy1 = 1.0 - ty, ty
    # Nested selects: the 4 nonzero rows per point are mutually exclusive.
    wzy = jnp.where(
        k == zy0, wz0 * wy0,
        jnp.where(k == zy0 + 1, wz0 * wy1,
                  jnp.where(k == zy0 + H, wz1 * wy0,
                            jnp.where(k == zy0 + H + 1, wz1 * wy1, zero))))

    # rows[c*W + x, t] = sum_{z,y} w_z*w_y * vol[c, z, y, x]   -> [C*W, T]
    rows = jnp.dot(vol_ref[...], wzy, preferred_element_type=jnp.float32)

    # ---- Stage 2 (VPU): blend the x0 / x0+1 columns -------------------------
    ix = jax.lax.broadcasted_iota(jnp.int32, (W, T), 0)
    wx = jnp.where(ix == x0, 1.0 - tx,
                   jnp.where(ix == x0 + 1, tx, zero))          # [W, T]

    outs = []
    for c in range(C):                               # C is small & static
        rc = rows[c * W:(c + 1) * W, :]              # [W, T]
        outs.append(jnp.sum(rc * wx, axis=0, keepdims=True))   # [1, T]
    out_ref[...] = jnp.concatenate(outs, axis=0)     # [C, T], lane-dense store


class FeatureVolume:
    """JAX/Pallas port of the PyTorch FeatureVolume module."""

    MAX_T = 1024   # points per grid step, cap (lane axis in-kernel)

    def __init__(self, vol_values):
        # vol_values: [1, C, A, B, E] -> fm: [C, E, A, B] = [C, D, H, W]
        # (torch permute [0, 1, 4, 2, 3])
        fm = jnp.transpose(vol_values.astype(jnp.float32), (0, 1, 4, 2, 3))[0]
        self.C, self.D, self.H, self.W = fm.shape
        # Table laid out [c*W + x, z*H + y]; last dim D*H is the matmul K axis
        # and is 128-aligned for 16^3 volumes.
        self.vol_table = jnp.transpose(fm, (0, 3, 1, 2)).reshape(
            self.C * self.W, self.D * self.H)

    def __call__(self, x):
        orig_shape = x.shape
        if x.ndim == 3:            # second branch of the PyTorch forward: [N, K, 3]
            pts = x.reshape(-1, 3)
        else:                      # main branch: [N, 3]
            pts = x
        pts = pts.astype(jnp.float32)
        N = pts.shape[0]

        # Adaptive tile: multiple of 128 (lane-dense), capped at MAX_T so small
        # calls don't pad to a full tile while large calls amortize grid-step
        # overhead.
        T = min(self.MAX_T, pl.cdiv(max(N, 1), 128) * 128)
        Np = pl.cdiv(N, T) * T
        coords = jnp.pad(pts, ((0, Np - N), (0, 0))).T   # [3, Np], points on lanes

        kernel = functools.partial(_trilinear_kernel,
                                   D=self.D, H=self.H, W=self.W, C=self.C)
        out_t = pl.pallas_call(
            kernel,
            out_shape=jax.ShapeDtypeStruct((self.C, Np), jnp.float32),
            grid=(Np // T,),
            in_specs=[
                pl.BlockSpec((3, T), lambda i: (0, i)),
                # Constant table: whole array resident in VMEM, not revolved.
                pl.BlockSpec(memory_space=pltpu.MemorySpace.VMEM),
            ],
            out_specs=pl.BlockSpec((self.C, T), lambda i: (0, i)),
            compiler_params=pltpu.CompilerParams(
                dimension_semantics=("parallel",)),
        )(coords, self.vol_table)

        out = out_t[:, :N].T       # [N, C]
        if x.ndim == 3:
            out = out.reshape(orig_shape[0], orig_shape[1], self.C)
        return out


def _reference_sample(vol_values, pts):
    """Pure-JAX reference of F.grid_sample(align_corners=True, border)."""
    fm = jnp.transpose(vol_values.astype(jnp.float32), (0, 1, 4, 2, 3))[0]  # [C,D,H,W]
    C, D, H, W = fm.shape
    vol = jnp.transpose(fm, (1, 2, 3, 0))  # [D,H,W,C]

    def prep(c, size):
        c = jnp.clip((c + 1.0) * 0.5 * (size - 1), 0.0, size - 1)
        c0 = jnp.clip(jnp.floor(c), 0, size - 2).astype(jnp.int32)
        return c0, c - c0

    x0, tx = prep(pts[:, 0], W)
    y0, ty = prep(pts[:, 1], H)
    z0, tz = prep(pts[:, 2], D)

    out = jnp.zeros((pts.shape[0], C), jnp.float32)
    for dz, wz in ((0, 1.0 - tz), (1, tz)):
        for dy, wy in ((0, 1.0 - ty), (1, ty)):
            for dx, wx in ((0, 1.0 - tx), (1, tx)):
                out = out + (wz * wy * wx)[:, None] * vol[z0 + dz, y0 + dy, x0 + dx]
    return out


if __name__ == "__main__":
    key = jax.random.PRNGKey(0)
    k_vol, k_pts, k_pts2 = jax.random.split(key, 3)

    # Deterministic synthetic feature volume: [1, C=4, 16, 16, 16]
    vol_values = jax.random.normal(k_vol, (1, 4, 16, 16, 16), dtype=jnp.float32)
    fv = FeatureVolume(vol_values)

    # Main branch: x of shape [N_pt, 3]; coords slightly out of [-1, 1] to
    # exercise padding_mode='border'.
    x = jax.random.uniform(k_pts, (200, 3), minval=-1.1, maxval=1.1,
                           dtype=jnp.float32)
    out = jax.block_until_ready(fv(x))
    ref = _reference_sample(vol_values, x)
    assert out.shape == (200, 4), out.shape
    assert jnp.allclose(out, ref, atol=1e-5, rtol=1e-5)

    # Second branch: x of shape [N, K, 3] -> output [N, K, C]
    x2 = jax.random.uniform(k_pts2, (10, 7, 3), minval=-1.0, maxval=1.0,
                            dtype=jnp.float32)
    out2 = jax.block_until_ready(fv(x2))
    ref2 = _reference_sample(vol_values, x2.reshape(-1, 3)).reshape(10, 7, 4)
    assert out2.shape == (10, 7, 4), out2.shape
    assert jnp.allclose(out2, ref2, atol=1e-5, rtol=1e-5)

    print("KERNEL_OK")
</pallas_src>

<mosaic_0001>
module attributes {stable_mosaic.version = 11 : i64} {
  func.func @_trilinear_kernel(%arg0: i32, %arg1: memref<3x256xf32, #tpu.memory_space<vmem>>, %arg2: memref<64x256xf32, #tpu.memory_space<vmem>>, %arg3: memref<4x256xf32, #tpu.memory_space<vmem>>) attributes {dimension_semantics = [#tpu.dimension_semantics<parallel>], iteration_bounds = array<i64: 1>, scalar_prefetch = 0 : i64, scratch_operands = 0 : i64, tpu.core_type = #tpu.core_type<tc>, window_params = [{transform_indices = @transform_0, window_bounds = array<i64: 3, 256>}, {pipeline_mode = #tpu.pipeline_mode<synchronous>, transform_indices = @transform_1, window_bounds = array<i64: 64, 256>}, {transform_indices = @transform_2, window_bounds = array<i64: 4, 256>}]} {
    %c0 = arith.constant 0 : index
    %c0_0 = arith.constant 0 : index
    %0 = vector.load %arg1[%c0, %c0_0] : memref<3x256xf32, #tpu.memory_space<vmem>>, vector<1x256xf32>
    %cst = arith.constant 1.000000e+00 : f32
    %1 = vector.broadcast %cst : f32 to vector<1x256xf32>
    %2 = arith.addf %0, %1 : vector<1x256xf32>
    %cst_1 = arith.constant 5.000000e-01 : f32
    %3 = vector.broadcast %cst_1 : f32 to vector<1x256xf32>
    %4 = arith.mulf %2, %3 : vector<1x256xf32>
    %cst_2 = arith.constant 1.500000e+01 : f32
    %5 = vector.broadcast %cst_2 : f32 to vector<1x256xf32>
    %6 = arith.mulf %4, %5 : vector<1x256xf32>
    %cst_3 = arith.constant 0.000000e+00 : f32
    %cst_4 = arith.constant 1.500000e+01 : f32
    %7 = vector.broadcast %cst_3 : f32 to vector<1x256xf32>
    %8 = arith.maximumf %7, %6 : vector<1x256xf32>
    %9 = vector.broadcast %cst_4 : f32 to vector<1x256xf32>
    %10 = arith.minimumf %9, %8 : vector<1x256xf32>
    %11 = math.floor %10 : vector<1x256xf32>
    %cst_5 = arith.constant 0.000000e+00 : f32
    %cst_6 = arith.constant 1.400000e+01 : f32
    %12 = vector.broadcast %cst_5 : f32 to vector<1x256xf32>
    %13 = arith.maximumf %12, %11 : vector<1x256xf32>
    %14 = vector.broadcast %cst_6 : f32 to vector<1x256xf32>
    %15 = arith.minimumf %14, %13 : vector<1x256xf32>
    %16 = arith.fptosi %15 : vector<1x256xf32> to vector<1x256xi32>
    %17 = arith.subf %10, %15 : vector<1x256xf32>
    %c1 = arith.constant 1 : index
    %c0_7 = arith.constant 0 : index
    %18 = vector.load %arg1[%c1, %c0_7] : memref<3x256xf32, #tpu.memory_space<vmem>>, vector<1x256xf32>
    %cst_8 = arith.constant 1.000000e+00 : f32
    %19 = vector.broadcast %cst_8 : f32 to vector<1x256xf32>
    %20 = arith.addf %18, %19 : vector<1x256xf32>
    %cst_9 = arith.constant 5.000000e-01 : f32
    %21 = vector.broadcast %cst_9 : f32 to vector<1x256xf32>
    %22 = arith.mulf %20, %21 : vector<1x256xf32>
    %cst_10 = arith.constant 1.500000e+01 : f32
    %23 = vector.broadcast %cst_10 : f32 to vector<1x256xf32>
    %24 = arith.mulf %22, %23 : vector<1x256xf32>
    %cst_11 = arith.constant 0.000000e+00 : f32
    %cst_12 = arith.constant 1.500000e+01 : f32
    %25 = vector.broadcast %cst_11 : f32 to vector<1x256xf32>
    %26 = arith.maximumf %25, %24 : vector<1x256xf32>
    %27 = vector.broadcast %cst_12 : f32 to vector<1x256xf32>
    %28 = arith.minimumf %27, %26 : vector<1x256xf32>
    %29 = math.floor %28 : vector<1x256xf32>
    %cst_13 = arith.constant 0.000000e+00 : f32
    %cst_14 = arith.constant 1.400000e+01 : f32
    %30 = vector.broadcast %cst_13 : f32 to vector<1x256xf32>
    %31 = arith.maximumf %30, %29 : vector<1x256xf32>
    %32 = vector.broadcast %cst_14 : f32 to vector<1x256xf32>
    %33 = arith.minimumf %32, %31 : vector<1x256xf32>
    %34 = arith.fptosi %33 : vector<1x256xf32> to vector<1x256xi32>
    %35 = arith.subf %28, %33 : vector<1x256xf32>
    %c2 = arith.constant 2 : index
    %c0_15 = arith.constant 0 : index
    %36 = vector.load %arg1[%c2, %c0_15] : memref<3x256xf32, #tpu.memory_space<vmem>>, vector<1x256xf32>
    %cst_16 = arith.constant 1.000000e+00 : f32
    %37 = vector.broadcast %cst_16 : f32 to vector<1x256xf32>
    %38 = arith.addf %36, %37 : vector<1x256xf32>
    %cst_17 = arith.constant 5.000000e-01 : f32
    %39 = vector.broadcast %cst_17 : f32 to vector<1x256xf32>
    %40 = arith.mulf %38, %39 : vector<1x256xf32>
    %cst_18 = arith.constant 1.500000e+01 : f32
    %41 = vector.broadcast %cst_18 : f32 to vector<1x256xf32>
    %42 = arith.mulf %40, %41 : vector<1x256xf32>
    %cst_19 = arith.constant 0.000000e+00 : f32
    %cst_20 = arith.constant 1.500000e+01 : f32
    %43 = vector.broadcast %cst_19 : f32 to vector<1x256xf32>
    %44 = arith.maximumf %43, %42 : vector<1x256xf32>
    %45 = vector.broadcast %cst_20 : f32 to vector<1x256xf32>
    %46 = arith.minimumf %45, %44 : vector<1x256xf32>
    %47 = math.floor %46 : vector<1x256xf32>
    %cst_21 = arith.constant 0.000000e+00 : f32
    %cst_22 = arith.constant 1.400000e+01 : f32
    %48 = vector.broadcast %cst_21 : f32 to vector<1x256xf32>
    %49 = arith.maximumf %48, %47 : vector<1x256xf32>
    %50 = vector.broadcast %cst_22 : f32 to vector<1x256xf32>
    %51 = arith.minimumf %50, %49 : vector<1x256xf32>
    %52 = arith.fptosi %51 : vector<1x256xf32> to vector<1x256xi32>
    %53 = arith.subf %46, %51 : vector<1x256xf32>
    %c16_i32 = arith.constant 16 : i32
    %54 = vector.broadcast %c16_i32 : i32 to vector<1x256xi32>
    %55 = arith.muli %52, %54 : vector<1x256xi32>
    %56 = arith.addi %55, %34 : vector<1x256xi32>
    %57 = tpu.iota {dimensions = array<i32: 0>} : vector<256x256xi32>
    %cst_23 = arith.constant 1.000000e+00 : f32
    %58 = vector.broadcast %cst_23 : f32 to vector<1x256xf32>
    %59 = arith.subf %58, %53 : vector<1x256xf32>
    %cst_24 = arith.constant 1.000000e+00 : f32
    %60 = vector.broadcast %cst_24 : f32 to vector<1x256xf32>
    %61 = arith.subf %60, %35 : vector<1x256xf32>
    %62 = vector.broadcast %56 : vector<1x256xi32> to vector<256x256xi32>
    %63 = arith.cmpi eq, %57, %62 : vector<256x256xi32>
    %64 = arith.mulf %59, %61 : vector<1x256xf32>
    %c1_i32 = arith.constant 1 : i32
    %65 = vector.broadcast %c1_i32 : i32 to vector<1x256xi32>
    %66 = arith.addi %56, %65 : vector<1x256xi32>
    %67 = vector.broadcast %66 : vector<1x256xi32> to vector<256x256xi32>
    %68 = arith.cmpi eq, %57, %67 : vector<256x256xi32>
    %69 = arith.mulf %59, %35 : vector<1x256xf32>
    %c16_i32_25 = arith.constant 16 : i32
    %70 = vector.broadcast %c16_i32_25 : i32 to vector<1x256xi32>
    %71 = arith.addi %56, %70 : vector<1x256xi32>
    %72 = vector.broadcast %71 : vector<1x256xi32> to vector<256x256xi32>
    %73 = arith.cmpi eq, %57, %72 : vector<256x256xi32>
    %74 = arith.mulf %53, %61 : vector<1x256xf32>
    %c16_i32_26 = arith.constant 16 : i32
    %75 = vector.broadcast %c16_i32_26 : i32 to vector<1x256xi32>
    %76 = arith.addi %56, %75 : vector<1x256xi32>
    %c1_i32_27 = arith.constant 1 : i32
    %77 = vector.broadcast %c1_i32_27 : i32 to vector<1x256xi32>
    %78 = arith.addi %76, %77 : vector<1x256xi32>
    %79 = vector.broadcast %78 : vector<1x256xi32> to vector<256x256xi32>
    %80 = arith.cmpi eq, %57, %79 : vector<256x256xi32>
    %81 = arith.mulf %53, %35 : vector<1x256xf32>
    %cst_28 = arith.constant 0.000000e+00 : f32
    %82 = vector.shape_cast %81 : vector<1x256xf32> to vector<1x256xf32>
    %83 = vector.broadcast %82 : vector<1x256xf32> to vector<256x256xf32>
    %84 = vector.broadcast %cst_28 : f32 to vector<256x256xf32>
    %85 = arith.select %80, %83, %84 : vector<256x256xi1>, vector<256x256xf32>
    %86 = vector.shape_cast %74 : vector<1x256xf32> to vector<1x256xf32>
    %87 = vector.broadcast %86 : vector<1x256xf32> to vector<256x256xf32>
    %88 = arith.select %73, %87, %85 : vector<256x256xi1>, vector<256x256xf32>
    %89 = vector.shape_cast %69 : vector<1x256xf32> to vector<1x256xf32>
    %90 = vector.broadcast %89 : vector<1x256xf32> to vector<256x256xf32>
    %91 = arith.select %68, %90, %88 : vector<256x256xi1>, vector<256x256xf32>
    %92 = vector.shape_cast %64 : vector<1x256xf32> to vector<1x256xf32>
    %93 = vector.broadcast %92 : vector<1x256xf32> to vector<256x256xf32>
    %94 = arith.select %63, %93, %91 : vector<256x256xi1>, vector<256x256xf32>
    %c0_29 = arith.constant 0 : index
    %c0_30 = arith.constant 0 : index
    %95 = vector.load %arg2[%c0_29, %c0_30] : memref<64x256xf32, #tpu.memory_space<vmem>>, vector<64x256xf32>
    %cst_31 = arith.constant dense<0.000000e+00> : vector<64x256xf32>
    %96 = tpu.matmul %95, %94, %cst_31 {dimension_numbers = #tpu.dot_dimension_numbers<[1], [0], [0], [1], [0, 0, 1, 1], [], []>} : vector<64x256xf32>, vector<256x256xf32>, vector<64x256xf32> -> vector<64x256xf32>
    %97 = tpu.iota {dimensions = array<i32: 0>} : vector<16x256xi32>
    %98 = vector.broadcast %16 : vector<1x256xi32> to vector<16x256xi32>
    %99 = arith.cmpi eq, %97, %98 : vector<16x256xi32>
    %cst_32 = arith.constant 1.000000e+00 : f32
    %100 = vector.broadcast %cst_32 : f32 to vector<1x256xf32>
    %101 = arith.subf %100, %17 : vector<1x256xf32>
    %c1_i32_33 = arith.constant 1 : i32
    %102 = vector.broadcast %c1_i32_33 : i32 to vector<1x256xi32>
    %103 = arith.addi %16, %102 : vector<1x256xi32>
    %104 = vector.broadcast %103 : vector<1x256xi32> to vector<16x256xi32>
    %105 = arith.cmpi eq, %97, %104 : vector<16x256xi32>
    %cst_34 = arith.constant 0.000000e+00 : f32
    %106 = vector.shape_cast %17 : vector<1x256xf32> to vector<1x256xf32>
    %107 = vector.broadcast %106 : vector<1x256xf32> to vector<16x256xf32>
    %108 = vector.broadcast %cst_34 : f32 to vector<16x256xf32>
    %109 = arith.select %105, %107, %108 : vector<16x256xi1>, vector<16x256xf32>
    %110 = vector.shape_cast %101 : vector<1x256xf32> to vector<1x256xf32>
    %111 = vector.broadcast %110 : vector<1x256xf32> to vector<16x256xf32>
    %112 = arith.select %99, %111, %109 : vector<16x256xi1>, vector<16x256xf32>
    %113 = vector.extract_strided_slice %96 {offsets = [0, 0], sizes = [16, 256], strides = [1, 1]} : vector<64x256xf32> to vector<16x256xf32>
    %114 = arith.mulf %113, %112 : vector<16x256xf32>
    %cst_35 = arith.constant dense<0.000000e+00> : vector<256xf32>
    %115 = vector.multi_reduction <add>, %114, %cst_35 [0] : vector<16x256xf32> to vector<256xf32>
    %116 = vector.shape_cast %115 : vector<256xf32> to vector<1x256xf32>
    %117 = vector.extract_strided_slice %96 {offsets = [16, 0], sizes = [16, 256], strides = [1, 1]} : vector<64x256xf32> to vector<16x256xf32>
    %118 = arith.mulf %117, %112 : vector<16x256xf32>
    %cst_36 = arith.constant dense<0.000000e+00> : vector<256xf32>
    %119 = vector.multi_reduction <add>, %118, %cst_36 [0] : vector<16x256xf32> to vector<256xf32>
    %120 = vector.shape_cast %119 : vector<256xf32> to vector<1x256xf32>
    %121 = vector.extract_strided_slice %96 {offsets = [32, 0], sizes = [16, 256], strides = [1, 1]} : vector<64x256xf32> to vector<16x256xf32>
    %122 = arith.mulf %121, %112 : vector<16x256xf32>
    %cst_37 = arith.constant dense<0.000000e+00> : vector<256xf32>
    %123 = vector.multi_reduction <add>, %122, %cst_37 [0] : vector<16x256xf32> to vector<256xf32>
    %124 = vector.shape_cast %123 : vector<256xf32> to vector<1x256xf32>
    %125 = vector.extract_strided_slice %96 {offsets = [48, 0], sizes = [16, 256], strides = [1, 1]} : vector<64x256xf32> to vector<16x256xf32>
    %126 = arith.mulf %125, %112 : vector<16x256xf32>
    %cst_38 = arith.constant dense<0.000000e+00> : vector<256xf32>
    %127 = vector.multi_reduction <add>, %126, %cst_38 [0] : vector<16x256xf32> to vector<256xf32>
    %128 = vector.shape_cast %127 : vector<256xf32> to vector<1x256xf32>
    %129 = tpu.concatenate %116, %120, %124, %128 in 0 : vector<1x256xf32>, vector<1x256xf32>, vector<1x256xf32>, vector<1x256xf32> -> vector<4x256xf32>
    %c0_39 = arith.constant 0 : index
    %c0_40 = arith.constant 0 : index
    %130 = vector.load %arg3[%c0_39, %c0_40] : memref<4x256xf32, #tpu.memory_space<vmem>>, vector<4x256xf32>
    tpu.vector_store %arg3[%c0_39, %c0_40], %129 {strides = array<i32>} : memref<4x256xf32, #tpu.memory_space<vmem>>, vector<4x256xf32>,
    return
  }
  func.func @transform_0(%arg0: i32) -> (i32, i32) {
    %c0_i32 = arith.constant 0 : i32
    %c0_i32_0 = arith.constant 0 : i32
    return %c0_i32, %arg0 : i32, i32
  }
  func.func @transform_1(%arg0: i32) -> (i32, i32) {
    %c0_i32 = arith.constant 0 : i32
    %c0_i32_0 = arith.constant 0 : i32
    %c0_i32_1 = arith.constant 0 : i32
    return %c0_i32, %c0_i32_0 : i32, i32
  }
  func.func @transform_2(%arg0: i32) -> (i32, i32) {
    %c0_i32 = arith.constant 0 : i32
    %c0_i32_0 = arith.constant 0 : i32
    return %c0_i32, %arg0 : i32, i32
  }
}

</mosaic_0001>

<bundles_post_ra>
// kernel: tpu_custom_call.1
= control target key start
LH: loop header
LB: loop body
LE: loop exit
PB: predicated region body
PF: predicated region fallthrough
CT: control target
= control target key end

     0   :  { %7 = vsyncpa [#allocation3], 0  ;;  %s2379_s0 = inlined_call_operand.hbm [shape: f32[3,256], index: 0, kind: input, shape index: {}]   ;;  %s2380_s1 = inlined_call_operand.hbm [shape: f32[64,256], index: 1, kind: input, shape index: {}]   ;;  %s2381_s2 = inlined_call_operand.hbm [shape: f32[4,256], index: 2, kind: output, shape index: {}]  }
   0x1   :  { %8 = vsyncpa [#allocation6], 0 }
   0x2   :  { %9 = vsyncpa [#allocation4], 0  ;;  %s1171_s9 = smov [#allocation2]   ;;  %s1172_s11 = smov [#allocation5]  }
   0x3   :  { %s16_s10 = sshll.u32 %s1171_s9, 4  ;;  %s25_s12 = sshll.u32 %s1172_s11, 4  ;;  %s17_s10 = int_to_ptr.vmem [resolvable:$true] %s16_s10  ;;  %s1191_s12 = int_to_ptr.vmem [resolvable:$true] %s25_s12 }
   0x4   :  { %s1099_s15 = scalar_lea.hbm %s2379_s0, 128 }
   0x5   :  { %p1100_p0 = scmp.ne.s32.totalorder %s2379_s0, %s1099_s15  ;;  %p1103_p1 = scmp.lt.u32.totalorder %s1099_s15, %s2379_s0 }
   0x7   :  { %p1105_p2 = pnand %p1103_p1, %p1100_p0 }
   0x9   :  { %1108 = shalt.err (!%p1105_p2)
}
   0xa   :  { %s1109_s20 = scalar_lea.vmem %s17_s10, 128  ;;  %p1114_p4 = scmp.lt.s32.totalorder %s17_s10, %s17_s10 }
   0xb   :  { %p1110_p3 = scmp.ne.s32.totalorder %s17_s10, %s1109_s20  ;;  %p1115_p5 = scmp.lt.s32.totalorder %s1109_s20, %s1109_s20 }
   0xd   :  { %p1116_p6 = por %p1115_p5, %p1114_p4 }
   0xf   :  { %p1117_p7 = pnand %p1116_p6, %p1110_p3 }
  0x11   :  { %1120 = shalt.err (!%p1117_p7)
}
  0x12   :  { %19 = dma.hbm_to_vmem [thread:$0]  %s2379_s0, 128, %s17_s10, [#allocation3]  }
  0x13   :  { %s1121_s25 = scalar_lea.hbm %s2380_s1, 2048 }
  0x14   :  { %p1122_p8 = scmp.ne.s32.totalorder %s2380_s1, %s1121_s25  ;;  %p1125_p9 = scmp.lt.u32.totalorder %s1121_s25, %s2380_s1 }
  0x16   :  { %p1127_p10 = pnand %p1125_p9, %p1122_p8 }
  0x18   :  { %1130 = shalt.err (!%p1127_p10)
}
  0x19   :  { %s1131_s30 = scalar_lea.vmem %s1191_s12, 2048  ;;  %p1136_p12 = scmp.lt.s32.totalorder %s1191_s12, %s1191_s12 }
  0x1a   :  { %p1132_p11 = scmp.ne.s32.totalorder %s1191_s12, %s1131_s30  ;;  %p1137_p13 = scmp.lt.s32.totalorder %s1131_s30, %s1131_s30 }
  0x1c   :  { %p1138_p0 = por %p1137_p13, %p1136_p12 }
  0x1e   :  { %p1139_p1 = pnand %p1138_p0, %p1132_p11 }
  0x20   :  { %1142 = shalt.err (!%p1139_p1)
}
  0x21   :  { %s1173_s0 = smov 256   ;;  %s1174_s3 = smov 16  }
  0x22   :  { %31 = dma.hbm_to_vmem [thread:$0]  %s2380_s1, 2048, %s1191_s12, [#allocation6], %s1173_s0, %s1173_s0, %s1174_s3  }
  0x23   :  { %1165 = dma.done.wait [#allocation3], 128  }
  0x24   :  { %1166 = vsyncadd [#allocation3], 4294967168 }
  0x25   :  { %1167 = dma.done.wait [#allocation6], 2048  }
  0x26   :  { %1168 = vsyncadd [#allocation6], 4294965248  ;;  %v50_v0 = vld [vmem:[#allocation2 + $0x1] ss:$4 sm:$0x3]  ;;  %v75_v14 = vlaneseq  ;;  %s1175_s1 = smov [#allocation7]  }
  0x27   :  { %v62_v1 = vld [vmem:[#allocation2 + $0x2] ss:$4 sm:$0x3]  ;;  %v51_v2 = vadd.f32 1.0, %v50_v0  ;;  %s982_s6 = sshll.u32 %s1175_s1, 4  ;;  %s983_s6 = int_to_ptr.vmem [resolvable:$true] %s982_s6 }
  0x28   :  { %v63_v3 = vadd.f32 1.0, %v62_v1  ;;  %v1222_v19 = vshrl.u32 %v75_v14, 7  ;;  %s1143_s7 = scalar_lea.vmem %s983_s6, 128  ;;  %p1148_p3 = scmp.lt.s32.totalorder %s983_s6, %s983_s6 }
  0x29   :  { %v52_v4 = vmul.f32 0.5, %v51_v2  ;;  %p1144_p2 = scmp.ne.s32.totalorder %s983_s6, %s1143_s7  ;;  %p1149_p4 = scmp.lt.s32.totalorder %s1143_s7, %s1143_s7 }
  0x2a   :  { %v64_v5 = vmul.f32 0.5, %v63_v3  ;;  %v1225_v28 = vsub.s32 1, %v1222_v19  ;;  %v1228_v30 = vsub.s32 0, %v1222_v19  ;;  %v1231_v36 = vadd.s32 8, %v1222_v19 }
  0x2b   :  { %v53_v6 = vmul.f32 15.0, %v52_v4  ;;  %v1234_v37 = vadd.s32 16, %v1222_v19  ;;  %v1237_v38 = vadd.s32 24, %v1222_v19  ;;  %v1246_v41 = vadd.s32 32, %v1222_v19  ;;  %p1150_p5 = por %p1149_p4, %p1148_p3 }
  0x2c   :  { %v65_v7 = vmul.f32 15.0, %v64_v5  ;;  %v1249_v42 = vadd.s32 40, %v1222_v19 }
  0x2d   :  { %v54_v8 = vmax.f32 %v53_v6, 0.0  ;;  %p1151_p6 = pnand %p1150_p5, %p1144_p2 }
  0x2e   :  { %v66_v9 = vmax.f32 %v65_v7, 0.0 }
  0x2f   :  { %v55_v10 = vmin.f32 %v54_v8, 15.0 }
  0x30   :  { %v67_v11 = vmin.f32 %v66_v9, 15.0 }
  0x31   :  { %v56_v12 = vfloor.f32 %v55_v10 }
  0x32   :  { %v68_v13 = vfloor.f32 %v67_v11 }
  0x33   :  { %v57_v15 = vmax.f32 %v56_v12, 0.0 }
  0x34   :  { %v69_v16 = vmax.f32 %v68_v13, 0.0 }
  0x35   :  { %v58_v17 = vmin.f32 %v57_v15, 14.0 }
  0x36   :  { %v70_v18 = vmin.f32 %v69_v16, 14.0 }
  0x37   :  { %v1090_v20 = vtrunc.f32 %v58_v17  ;;  %v60_v21 = vsub.f32 %v55_v10, %v58_v17 }
  0x38   :  { %v1092_v22 = vtrunc.f32 %v70_v18  ;;  %v72_v23 = vsub.f32 %v67_v11, %v70_v18 }
  0x39   :  { %v1091_v24 = vcvt.f32.s32 %v1090_v20  ;;  %v109_v27 = vsub.f32 1.0, %v60_v21 }
  0x3a   :  { %v1093_v25 = vcvt.f32.s32 %v1092_v22  ;;  %v108_v26 = vsub.f32 1.0, %v72_v23  ;;  %v404_v29 = vmul.f32 %v72_v23, %v60_v21 }
  0x3b   :  { %v330_v34 = vmul.f32 %v109_v27, %v72_v23 }
  0x3c   :  { %v73_v31 = vmul.u32 16, %v1093_v25  ;;  %v182_v32 = vmul.f32 %v109_v27, %v108_v26  ;;  %v256_v33 = vmul.f32 %v108_v26, %v60_v21  ;;  %v1240_v39 = vrot.slane %v404_v29, %v1225_v28 }
  0x3d   :  { %v1243_v40 = vrot.slane %v404_v29, %v1228_v30  ;;  %v1258_v47 = vrot.slane %v330_v34, %v1225_v28  ;;  %v1267_v50 = vrot.slane %v330_v34, %v1228_v30  ;;  %v1444_v34 = vadd.s32 48, %v1222_v19 }
  0x3e   :  { %v74_v35 = vadd.s32 %v1091_v24, %v73_v31  ;;  %v1261_v48 = vrot.slane %v256_v33, %v1225_v28  ;;  %v1264_v49 = vrot.slane %v182_v32, %v1225_v28  ;;  %v1276_v53 = vrot.slane %v256_v33, %v1228_v30 }
  0x3f   :  { %v1279_v54 = vrot.slane %v182_v32, %v1228_v30 }
  0x40   :  { %v1252_v43 = vrot.slane %v74_v35, %v1225_v28  ;;  %v183_v44 = vadd.s32 1, %v74_v35  ;;  %v257_v45 = vadd.s32 16, %v74_v35  ;;  %v1255_v46 = vrot.slane %v74_v35, %v1228_v30 }
  0x42   :  { %v1270_v51 = vrot.slane %v183_v44, %v1225_v28  ;;  %v1273_v52 = vrot.slane %v257_v45, %v1225_v28  ;;  %vm119_vm0 = vcmp.eq.s32.totalorder %v1222_v19, %v1252_v43  ;;  %vm121_vm1 = vcmp.eq.s32.totalorder %v1231_v36, %v1252_v43 }
  0x43   :  { %v331_v55 = vadd.s32 1, %v257_v45  ;;  %v1286_v56 = vrot.slane %v183_v44, %v1228_v30  ;;  %vm118_vm4 = vcmp.eq.s32.totalorder %v1222_v19, %v1255_v46  ;;  %v1304_v58 = vrot.slane %v257_v45, %v1228_v30  ;;  %v706_v44 = vld [vmem:[#allocation5 + $0x8] sm:$0xff] }
  0x44   :  { %vm193_vm2 = vcmp.eq.s32.totalorder %v1222_v19, %v1270_v51  ;;  %vm195_vm3 = vcmp.eq.s32.totalorder %v1231_v36, %v1270_v51  ;;  %vm267_vm6 = vcmp.eq.s32.totalorder %v1222_v19, %v1273_v52  ;;  %vm269_vm7 = vcmp.eq.s32.totalorder %v1231_v36, %v1273_v52  ;;  %v714_v45 = vld [vmem:[#allocation5 + $0x48] sm:$0xff]  ;;  %785 = vmatprep.mubr.f32.mxu0 %v706_v44 }
  0x45   :  { %v1301_v57 = vrot.slane %v331_v55, %v1225_v28  ;;  %vm192_vm8 = vcmp.eq.s32.totalorder %v1222_v19, %v1286_v56  ;;  %vm194_vm9 = vcmp.eq.s32.totalorder %v1231_v36, %v1286_v56  ;;  %v1311_v59 = vrot.slane %v331_v55, %v1228_v30  ;;  %809 = vmatprep.mubr.f32.mxu1 %v714_v45 }
  0x46   :  { %vm266_vm13 = vcmp.eq.s32.totalorder %v1222_v19, %v1304_v58  ;;  %vm268_vm14 = vcmp.eq.s32.totalorder %v1231_v36, %v1304_v58  ;;  %vm125_vm15 = vcmp.eq.s32.totalorder %v1237_v38, %v1252_v43 }
  0x47   :  { %vm341_vm11 = vcmp.eq.s32.totalorder %v1222_v19, %v1301_v57  ;;  %vm343_vm12 = vcmp.eq.s32.totalorder %v1231_v36, %v1301_v57  ;;  %vm340_vm10 = vcmp.eq.s32.totalorder %v1222_v19, %v1311_v59  ;;  %vm342_vm5 = vcmp.eq.s32.totalorder %v1231_v36, %v1311_v59 }
  0x48   :  { %v417_v60 = vsel %vm341_vm11, %v1240_v39, 0.0  ;;  %v419_v61 = vsel %vm343_vm12, %v1240_v39, 0.0  ;;  %v416_v0 = vsel %vm340_vm10, %v1243_v40, 0.0  ;;  %v418_v1 = vsel %vm342_vm5, %v1243_v40, 0.0 }
  0x49   :  { %v492_v62 = vsel %vm267_vm6, %v1258_v47, %v417_v60  ;;  %v494_v63 = vsel %vm269_vm7, %v1258_v47, %v419_v61  ;;  %v491_v4 = vsel %vm266_vm13, %v1267_v50, %v416_v0  ;;  %v493_v5 = vsel %vm268_vm14, %v1267_v50, %v418_v1 }
  0x4a   :  { %v567_v2 = vsel %vm193_vm2, %v1261_v48, %v492_v62  ;;  %v569_v3 = vsel %vm195_vm3, %v1261_v48, %v494_v63  ;;  %v566_v8 = vsel %vm192_vm8, %v1276_v53, %v491_v4  ;;  %v568_v9 = vsel %vm194_vm9, %v1276_v53, %v493_v5 }
  0x4b   :  { %v642_v6 = vsel %vm119_vm0, %v1264_v49, %v567_v2  ;;  %v644_v7 = vsel %vm121_vm1, %v1264_v49, %v569_v3  ;;  %v641_v11 = vsel %vm118_vm4, %v1279_v54, %v566_v8  ;;  %vm2382_vm0 = vcmp.eq.s32.totalorder %v1231_v36, %v1255_v46 }
  0x4c   :  { %v992_v10 = vpack.c.bf16 %v644_v7, %v642_v6  ;;  %v643_v12 = vsel %vm2382_vm0, %v1279_v54, %v568_v9  ;;  %vm197_vm1 = vcmp.eq.s32.totalorder %v1234_v37, %v1270_v51  ;;  %vm271_vm2 = vcmp.eq.s32.totalorder %v1234_v37, %v1273_v52 }
  0x4d   :  { %v994_v13 = vpack.c.bf16 %v643_v12, %v641_v11  ;;  %vm273_vm3 = vcmp.eq.s32.totalorder %v1237_v38, %v1273_v52  ;;  %vm345_vm5 = vcmp.eq.s32.totalorder %v1234_v37, %v1301_v57  ;;  %vm199_vm4 = vcmp.eq.s32.totalorder %v1237_v38, %v1270_v51 }
  0x4e   :  { %993 = vmatprep.subr.bf16.mxu0 %v992_v10  ;;  %1056 = vmatprep.subr.bf16.mxu1 %v992_v10  ;;  %vm347_vm6 = vcmp.eq.s32.totalorder %v1237_v38, %v1301_v57  ;;  %v421_v14 = vsel %vm345_vm5, %v1240_v39, 0.0  ;;  %vm122_vm7 = vcmp.eq.s32.totalorder %v1234_v37, %v1255_v46  ;;  %vm196_vm8 = vcmp.eq.s32.totalorder %v1234_v37, %v1286_v56 }
  0x4f   :  { %995 = vmatpush1.bf16.msra.mxu0 %v994_v13  ;;  %1072 = vmatpush1.bf16.msra.mxu1 %v994_v13  ;;  %v423_v15 = vsel %vm347_vm6, %v1240_v39, 0.0  ;;  %v496_v16 = vsel %vm271_vm2, %v1258_v47, %v421_v14  ;;  %vm198_vm9 = vcmp.eq.s32.totalorder %v1237_v38, %v1286_v56  ;;  %vm270_vm10 = vcmp.eq.s32.totalorder %v1234_v37, %v1304_v58 }
  0x50   :  { %v498_v17 = vsel %vm273_vm3, %v1258_v47, %v423_v15  ;;  %v571_v18 = vsel %vm197_vm1, %v1261_v48, %v496_v16  ;;  %vm272_vm11 = vcmp.eq.s32.totalorder %v1237_v38, %v1304_v58  ;;  %vm2383_vm12 = vcmp.eq.s32.totalorder %v1234_v37, %v1252_v43 }
  0x51   :  { %v573_v20 = vsel %vm199_vm4, %v1261_v48, %v498_v17  ;;  %v646_v21 = vsel %vm2383_vm12, %v1264_v49, %v571_v18  ;;  %vm344_vm13 = vcmp.eq.s32.totalorder %v1234_v37, %v1311_v59  ;;  %vm346_vm14 = vcmp.eq.s32.totalorder %v1237_v38, %v1311_v59 }
  0x52   :  { %v648_v22 = vsel %vm125_vm15, %v1264_v49, %v573_v20  ;;  %vm124_vm0 = vcmp.eq.s32.totalorder %v1237_v38, %v1255_v46  ;;  %v420_v23 = vsel %vm344_vm13, %v1243_v40, 0.0  ;;  %v422_v24 = vsel %vm346_vm14, %v1243_v40, 0.0 }
  0x53   :  { %v996_v25 = vpack.c.bf16 %v648_v22, %v646_v21  ;;  %v495_v26 = vsel %vm270_vm10, %v1267_v50, %v420_v23  ;;  %v497_v27 = vsel %vm272_vm11, %v1267_v50, %v422_v24  ;;  %vm201_vm15 = vcmp.eq.s32.totalorder %v1246_v41, %v1270_v51 }
  0x54   :  { %v570_v29 = vsel %vm196_vm8, %v1276_v53, %v495_v26  ;;  %v572_v31 = vsel %vm198_vm9, %v1276_v53, %v497_v27  ;;  %vm203_vm1 = vcmp.eq.s32.totalorder %v1249_v42, %v1270_v51  ;;  %vm275_vm2 = vcmp.eq.s32.totalorder %v1246_v41, %v1273_v52 }
  0x55   :  { %997 = vmatprep.subr.bf16.mxu0 %v996_v25  ;;  %1057 = vmatprep.subr.bf16.mxu1 %v996_v25  ;;  %v645_v32 = vsel %vm122_vm7, %v1279_v54, %v570_v29  ;;  %v647_v33 = vsel %vm124_vm0, %v1279_v54, %v572_v31  ;;  %vm277_vm3 = vcmp.eq.s32.totalorder %v1249_v42, %v1273_v52  ;;  %v1463_v61 = vadd.s32 56, %v1222_v19 }
  0x56   :  { %v998_v35 = vpack.c.bf16 %v647_v33, %v645_v32  ;;  %vm349_vm5 = vcmp.eq.s32.totalorder %v1246_v41, %v1301_v57  ;;  %vm351_vm4 = vcmp.eq.s32.totalorder %v1249_v42, %v1301_v57  ;;  %vm127_vm6 = vcmp.eq.s32.totalorder %v1246_v41, %v1252_v43 }
  0x57   :  { %vm129_vm7 = vcmp.eq.s32.totalorder %v1249_v42, %v1252_v43  ;;  %v425_v37 = vsel %vm349_vm5, %v1240_v39, 0.0  ;;  %v427_v38 = vsel %vm351_vm4, %v1240_v39, 0.0  ;;  %vm126_vm8 = vcmp.eq.s32.totalorder %v1246_v41, %v1255_v46 }
  0x58   :  { %999 = vmatpush1.bf16.msra.mxu0 %v998_v35  ;;  %1073 = vmatpush1.bf16.msra.mxu1 %v998_v35  ;;  %v500_v55 = vsel %vm275_vm2, %v1258_v47, %v425_v37  ;;  %v502_v60 = vsel %vm277_vm3, %v1258_v47, %v427_v38  ;;  %vm200_vm9 = vcmp.eq.s32.totalorder %v1246_v41, %v1286_v56  ;;  %v1544_v17 = vadd.s32 72, %v1222_v19 }
  0x59   :  { %v575_v62 = vsel %vm201_vm15, %v1261_v48, %v500_v55  ;;  %v577_v63 = vsel %vm203_vm1, %v1261_v48, %v502_v60  ;;  %vm274_vm10 = vcmp.eq.s32.totalorder %v1246_v41, %v1304_v58  ;;  %vm276_vm11 = vcmp.eq.s32.totalorder %v1249_v42, %v1304_v58 }
  0x5a   :  { %v650_v0 = vsel %vm127_vm6, %v1264_v49, %v575_v62  ;;  %v652_v1 = vsel %vm129_vm7, %v1264_v49, %v577_v63  ;;  %vm348_vm12 = vcmp.eq.s32.totalorder %v1246_v41, %v1311_v59  ;;  %vm202_vm13 = vcmp.eq.s32.totalorder %v1249_v42, %v1286_v56 }
  0x5b   :  { %v1000_v2 = vpack.c.bf16 %v652_v1, %v650_v0  ;;  %vm350_vm14 = vcmp.eq.s32.totalorder %v1249_v42, %v1311_v59  ;;  %v424_v3 = vsel %vm348_vm12, %v1243_v40, 0.0  ;;  %vm128_vm0 = vcmp.eq.s32.totalorder %v1249_v42, %v1255_v46 }
  0x5c   :  { %v426_v4 = vsel %vm350_vm14, %v1243_v40, 0.0  ;;  %v499_v5 = vsel %vm274_vm10, %v1267_v50, %v424_v3  ;;  %vm131_vm15 = vcmp.eq.s32.totalorder %v1444_v34, %v1252_v43  ;;  %vm205_vm1 = vcmp.eq.s32.totalorder %v1444_v34, %v1270_v51 }
  0x5d   :  { %1001 = vmatprep.subr.bf16.mxu0 %v1000_v2  ;;  %1058 = vmatprep.subr.bf16.mxu1 %v1000_v2  ;;  %v501_v6 = vsel %vm276_vm11, %v1267_v50, %v426_v4  ;;  %v574_v7 = vsel %vm200_vm9, %v1276_v53, %v499_v5  ;;  %v1508_v42 = vadd.s32 64, %v1222_v19  ;;  %vm279_vm2 = vcmp.eq.s32.totalorder %v1444_v34, %v1273_v52 }
  0x5e   :  { %v576_v8 = vsel %vm202_vm13, %v1276_v53, %v501_v6  ;;  %v649_v9 = vsel %vm126_vm8, %v1279_v54, %v574_v7  ;;  %vm281_vm3 = vcmp.eq.s32.totalorder %v1463_v61, %v1273_v52  ;;  %vm207_vm5 = vcmp.eq.s32.totalorder %v1463_v61, %v1270_v51 }
  0x5f   :  { %v651_v10 = vsel %vm128_vm0, %v1279_v54, %v576_v8  ;;  %vm353_vm4 = vcmp.eq.s32.totalorder %v1444_v34, %v1301_v57  ;;  %vm355_vm6 = vcmp.eq.s32.totalorder %v1463_v61, %v1301_v57  ;;  %vm133_vm7 = vcmp.eq.s32.totalorder %v1463_v61, %v1252_v43 }
  0x60   :  { %v1002_v11 = vpack.c.bf16 %v651_v10, %v649_v9  ;;  %v429_v41 = vsel %vm353_vm4, %v1240_v39, 0.0  ;;  %v431_v12 = vsel %vm355_vm6, %v1240_v39, 0.0  ;;  %vm130_vm8 = vcmp.eq.s32.totalorder %v1444_v34, %v1255_v46 }
  0x61   :  { %v504_v13 = vsel %vm279_vm2, %v1258_v47, %v429_v41  ;;  %v506_v14 = vsel %vm281_vm3, %v1258_v47, %v431_v12  ;;  %vm204_vm9 = vcmp.eq.s32.totalorder %v1444_v34, %v1286_v56  ;;  %vm278_vm10 = vcmp.eq.s32.totalorder %v1444_v34, %v1304_v58 }
  0x62   :  { %1003 = vmatpush1.bf16.msra.mxu0 %v1002_v11  ;;  %1074 = vmatpush1.bf16.msra.mxu1 %v1002_v11  ;;  %v579_v15 = vsel %vm205_vm1, %v1261_v48, %v504_v13  ;;  %v581_v16 = vsel %vm207_vm5, %v1261_v48, %v506_v14  ;;  %vm280_vm11 = vcmp.eq.s32.totalorder %v1463_v61, %v1304_v58  ;;  %v1574_v27 = vadd.s32 80, %v1222_v19 }
  0x63   :  { %v654_v18 = vsel %vm131_vm15, %v1264_v49, %v579_v15  ;;  %v656_v20 = vsel %vm133_vm7, %v1264_v49, %v581_v16  ;;  %vm352_vm12 = vcmp.eq.s32.totalorder %v1444_v34, %v1311_v59  ;;  %vm206_vm13 = vcmp.eq.s32.totalorder %v1463_v61, %v1286_v56 }
  0x64   :  { %v1004_v21 = vpack.c.bf16 %v656_v20, %v654_v18  ;;  %vm354_vm14 = vcmp.eq.s32.totalorder %v1463_v61, %v1311_v59  ;;  %v428_v22 = vsel %vm352_vm12, %v1243_v40, 0.0  ;;  %vm132_vm0 = vcmp.eq.s32.totalorder %v1463_v61, %v1255_v46 }
  0x65   :  { %v430_v23 = vsel %vm354_vm14, %v1243_v40, 0.0  ;;  %v503_v24 = vsel %vm278_vm10, %v1267_v50, %v428_v22  ;;  %vm135_vm15 = vcmp.eq.s32.totalorder %v1508_v42, %v1252_v43  ;;  %vm209_vm1 = vcmp.eq.s32.totalorder %v1508_v42, %v1270_v51 }
  0x66   :  { %1005 = vmatprep.subr.bf16.mxu0 %v1004_v21  ;;  %1059 = vmatprep.subr.bf16.mxu1 %v1004_v21  ;;  %v505_v25 = vsel %vm280_vm11, %v1267_v50, %v430_v23  ;;  %v578_v26 = vsel %vm204_vm9, %v1276_v53, %v503_v24  ;;  %vm283_vm2 = vcmp.eq.s32.totalorder %v1508_v42, %v1273_v52  ;;  %v1610_v55 = vadd.s32 88, %v1222_v19 }
  0x67   :  { %v580_v29 = vsel %vm206_vm13, %v1276_v53, %v505_v25  ;;  %v653_v31 = vsel %vm130_vm8, %v1279_v54, %v578_v26  ;;  %vm285_vm3 = vcmp.eq.s32.totalorder %v1544_v17, %v1273_v52  ;;  %vm211_vm5 = vcmp.eq.s32.totalorder %v1544_v17, %v1270_v51 }
  0x68   :  { %v655_v32 = vsel %vm132_vm0, %v1279_v54, %v580_v29  ;;  %vm357_vm4 = vcmp.eq.s32.totalorder %v1508_v42, %v1301_v57  ;;  %vm359_vm6 = vcmp.eq.s32.totalorder %v1544_v17, %v1301_v57  ;;  %vm137_vm7 = vcmp.eq.s32.totalorder %v1544_v17, %v1252_v43 }
  0x69   :  { %v1006_v33 = vpack.c.bf16 %v655_v32, %v653_v31  ;;  %v433_v34 = vsel %vm357_vm4, %v1240_v39, 0.0  ;;  %v435_v35 = vsel %vm359_vm6, %v1240_v39, 0.0  ;;  %vm134_vm8 = vcmp.eq.s32.totalorder %v1508_v42, %v1255_v46 }
  0x6a   :  { %v508_v37 = vsel %vm283_vm2, %v1258_v47, %v433_v34  ;;  %v510_v38 = vsel %vm285_vm3, %v1258_v47, %v435_v35  ;;  %vm208_vm9 = vcmp.eq.s32.totalorder %v1508_v42, %v1286_v56  ;;  %vm282_vm10 = vcmp.eq.s32.totalorder %v1508_v42, %v1304_v58 }
  0x6b   :  { %1007 = vmatpush1.bf16.msra.mxu0 %v1006_v33  ;;  %1075 = vmatpush1.bf16.msra.mxu1 %v1006_v33  ;;  %v583_v44 = vsel %vm209_vm1, %v1261_v48, %v508_v37  ;;  %v585_v45 = vsel %vm211_vm5, %v1261_v48, %v510_v38  ;;  %vm284_vm11 = vcmp.eq.s32.totalorder %v1544_v17, %v1304_v58  ;;  %v1640_v4 = vadd.s32 96, %v1222_v19 }
  0x6c   :  { %v658_v60 = vsel %vm135_vm15, %v1264_v49, %v583_v44  ;;  %v660_v61 = vsel %vm137_vm7, %v1264_v49, %v585_v45  ;;  %vm356_vm12 = vcmp.eq.s32.totalorder %v1508_v42, %v1311_v59  ;;  %vm210_vm13 = vcmp.eq.s32.totalorder %v1544_v17, %v1286_v56 }
  0x6d   :  { %v1008_v62 = vpack.c.bf16 %v660_v61, %v658_v60  ;;  %vm358_vm14 = vcmp.eq.s32.totalorder %v1544_v17, %v1311_v59  ;;  %v432_v63 = vsel %vm356_vm12, %v1243_v40, 0.0  ;;  %vm136_vm0 = vcmp.eq.s32.totalorder %v1544_v17, %v1255_v46 }
  0x6e   :  { %v434_v0 = vsel %vm358_vm14, %v1243_v40, 0.0  ;;  %v507_v1 = vsel %vm282_vm10, %v1267_v50, %v432_v63  ;;  %vm139_vm15 = vcmp.eq.s32.totalorder %v1574_v27, %v1252_v43  ;;  %vm213_vm1 = vcmp.eq.s32.totalorder %v1574_v27, %v1270_v51 }
  0x6f   :  { %1009 = vmatprep.subr.bf16.mxu0 %v1008_v62  ;;  %1060 = vmatprep.subr.bf16.mxu1 %v1008_v62  ;;  %v509_v2 = vsel %vm284_vm11, %v1267_v50, %v434_v0  ;;  %v582_v3 = vsel %vm208_vm9, %v1276_v53, %v507_v1  ;;  %vm287_vm2 = vcmp.eq.s32.totalorder %v1574_v27, %v1273_v52  ;;  %v1676_v13 = vadd.s32 104, %v1222_v19 }
  0x70   :  { %v584_v5 = vsel %vm210_vm13, %v1276_v53, %v509_v2  ;;  %v657_v6 = vsel %vm134_vm8, %v1279_v54, %v582_v3  ;;  %vm289_vm3 = vcmp.eq.s32.totalorder %v1610_v55, %v1273_v52  ;;  %vm215_vm5 = vcmp.eq.s32.totalorder %v1610_v55, %v1270_v51 }
  0x71   :  { %v659_v7 = vsel %vm136_vm0, %v1279_v54, %v584_v5  ;;  %vm361_vm4 = vcmp.eq.s32.totalorder %v1574_v27, %v1301_v57  ;;  %vm363_vm6 = vcmp.eq.s32.totalorder %v1610_v55, %v1301_v57  ;;  %vm141_vm7 = vcmp.eq.s32.totalorder %v1610_v55, %v1252_v43 }
  0x72   :  { %v1010_v8 = vpack.c.bf16 %v659_v7, %v657_v6  ;;  %v437_v42 = vsel %vm361_vm4, %v1240_v39, 0.0  ;;  %v439_v9 = vsel %vm363_vm6, %v1240_v39, 0.0  ;;  %vm138_vm8 = vcmp.eq.s32.totalorder %v1574_v27, %v1255_v46 }
  0x73   :  { %v512_v10 = vsel %vm287_vm2, %v1258_v47, %v437_v42  ;;  %v514_v11 = vsel %vm289_vm3, %v1258_v47, %v439_v9  ;;  %vm212_vm9 = vcmp.eq.s32.totalorder %v1574_v27, %v1286_v56  ;;  %vm286_vm10 = vcmp.eq.s32.totalorder %v1574_v27, %v1304_v58 }
  0x74   :  { %1011 = vmatpush1.bf16.msra.mxu0 %v1010_v8  ;;  %1076 = vmatpush1.bf16.msra.mxu1 %v1010_v8  ;;  %v587_v41 = vsel %vm213_vm1, %v1261_v48, %v512_v10  ;;  %v589_v12 = vsel %vm215_vm5, %v1261_v48, %v514_v11  ;;  %vm288_vm11 = vcmp.eq.s32.totalorder %v1610_v55, %v1304_v58  ;;  %v1706_v23 = vadd.s32 112, %v1222_v19 }
  0x75   :  { %v662_v14 = vsel %vm139_vm15, %v1264_v49, %v587_v41  ;;  %v664_v15 = vsel %vm141_vm7, %v1264_v49, %v589_v12  ;;  %vm360_vm12 = vcmp.eq.s32.totalorder %v1574_v27, %v1311_v59  ;;  %vm214_vm13 = vcmp.eq.s32.totalorder %v1610_v55, %v1286_v56 }
  0x76   :  { %v1012_v16 = vpack.c.bf16 %v664_v15, %v662_v14  ;;  %vm362_vm14 = vcmp.eq.s32.totalorder %v1610_v55, %v1311_v59  ;;  %v436_v17 = vsel %vm360_vm12, %v1243_v40, 0.0  ;;  %vm140_vm0 = vcmp.eq.s32.totalorder %v1610_v55, %v1255_v46 }
  0x77   :  { %v438_v18 = vsel %vm362_vm14, %v1243_v40, 0.0  ;;  %v511_v20 = vsel %vm286_vm10, %v1267_v50, %v436_v17  ;;  %vm143_vm15 = vcmp.eq.s32.totalorder %v1640_v4, %v1252_v43  ;;  %vm217_vm1 = vcmp.eq.s32.totalorder %v1640_v4, %v1270_v51 }
  0x78   :  { %1013 = vmatprep.subr.bf16.mxu0 %v1012_v16  ;;  %1061 = vmatprep.subr.bf16.mxu1 %v1012_v16  ;;  %v513_v21 = vsel %vm288_vm11, %v1267_v50, %v438_v18  ;;  %v586_v22 = vsel %vm212_vm9, %v1276_v53, %v511_v20  ;;  %vm291_vm2 = vcmp.eq.s32.totalorder %v1640_v4, %v1273_v52  ;;  %v1742_v37 = vadd.s32 120, %v1222_v19 }
  0x79   :  { %v588_v24 = vsel %vm214_vm13, %v1276_v53, %v513_v21  ;;  %v661_v25 = vsel %vm138_vm8, %v1279_v54, %v586_v22  ;;  %vm293_vm3 = vcmp.eq.s32.totalorder %v1676_v13, %v1273_v52  ;;  %vm219_vm5 = vcmp.eq.s32.totalorder %v1676_v13, %v1270_v51 }
  0x7a   :  { %v663_v26 = vsel %vm140_vm0, %v1279_v54, %v588_v24  ;;  %vm365_vm4 = vcmp.eq.s32.totalorder %v1640_v4, %v1301_v57  ;;  %vm367_vm6 = vcmp.eq.s32.totalorder %v1676_v13, %v1301_v57  ;;  %vm145_vm7 = vcmp.eq.s32.totalorder %v1676_v13, %v1252_v43 }
  0x7b   :  { %v1014_v29 = vpack.c.bf16 %v663_v26, %v661_v25  ;;  %v441_v27 = vsel %vm365_vm4, %v1240_v39, 0.0  ;;  %v443_v31 = vsel %vm367_vm6, %v1240_v39, 0.0  ;;  %vm142_vm8 = vcmp.eq.s32.totalorder %v1640_v4, %v1255_v46 }
  0x7c   :  { %v516_v32 = vsel %vm291_vm2, %v1258_v47, %v441_v27  ;;  %v518_v33 = vsel %vm293_vm3, %v1258_v47, %v443_v31  ;;  %vm216_vm9 = vcmp.eq.s32.totalorder %v1640_v4, %v1286_v56  ;;  %vm290_vm10 = vcmp.eq.s32.totalorder %v1640_v4, %v1304_v58 }
  0x7d   :  { %1015 = vmatpush1.bf16.msra.mxu0 %v1014_v29  ;;  %1077 = vmatpush1.bf16.msra.mxu1 %v1014_v29  ;;  %v591_v34 = vsel %vm217_vm1, %v1261_v48, %v516_v32  ;;  %v593_v35 = vsel %vm219_vm5, %v1261_v48, %v518_v33  ;;  %vm292_vm11 = vcmp.eq.s32.totalorder %v1676_v13, %v1304_v58  ;;  %v1772_v0 = vadd.s32 128, %v1222_v19 }
  0x7e   :  { %v666_v38 = vsel %vm143_vm15, %v1264_v49, %v591_v34  ;;  %v668_v44 = vsel %vm145_vm7, %v1264_v49, %v593_v35  ;;  %vm364_vm12 = vcmp.eq.s32.totalorder %v1640_v4, %v1311_v59  ;;  %vm218_vm13 = vcmp.eq.s32.totalorder %v1676_v13, %v1286_v56 }
  0x7f   :  { %v1016_v45 = vpack.c.bf16 %v668_v44, %v666_v38  ;;  %vm366_vm14 = vcmp.eq.s32.totalorder %v1676_v13, %v1311_v59  ;;  %v440_v55 = vsel %vm364_vm12, %v1243_v40, 0.0  ;;  %vm144_vm0 = vcmp.eq.s32.totalorder %v1676_v13, %v1255_v46 }
  0x80   :  { %v442_v60 = vsel %vm366_vm14, %v1243_v40, 0.0  ;;  %v515_v61 = vsel %vm290_vm10, %v1267_v50, %v440_v55  ;;  %vm147_vm15 = vcmp.eq.s32.totalorder %v1706_v23, %v1252_v43  ;;  %vm221_vm1 = vcmp.eq.s32.totalorder %v1706_v23, %v1270_v51 }
  0x81   :  { %1017 = vmatprep.subr.bf16.mxu0 %v1016_v45  ;;  %1062 = vmatprep.subr.bf16.mxu1 %v1016_v45  ;;  %v517_v62 = vsel %vm292_vm11, %v1267_v50, %v442_v60  ;;  %v590_v63 = vsel %vm216_vm9, %v1276_v53, %v515_v61  ;;  %vm295_vm2 = vcmp.eq.s32.totalorder %v1706_v23, %v1273_v52  ;;  %v1808_v10 = vadd.s32 136, %v1222_v19 }
  0x82   :  { %v592_v1 = vsel %vm218_vm13, %v1276_v53, %v517_v62  ;;  %v665_v2 = vsel %vm142_vm8, %v1279_v54, %v590_v63  ;;  %vm297_vm3 = vcmp.eq.s32.totalorder %v1742_v37, %v1273_v52  ;;  %vm223_vm5 = vcmp.eq.s32.totalorder %v1742_v37, %v1270_v51 }
  0x83   :  { %v667_v3 = vsel %vm144_vm0, %v1279_v54, %v592_v1  ;;  %vm369_vm4 = vcmp.eq.s32.totalorder %v1706_v23, %v1301_v57  ;;  %vm371_vm6 = vcmp.eq.s32.totalorder %v1742_v37, %v1301_v57  ;;  %vm149_vm7 = vcmp.eq.s32.totalorder %v1742_v37, %v1252_v43 }
  0x84   :  { %v1018_v5 = vpack.c.bf16 %v667_v3, %v665_v2  ;;  %v445_v4 = vsel %vm369_vm4, %v1240_v39, 0.0  ;;  %v447_v6 = vsel %vm371_vm6, %v1240_v39, 0.0  ;;  %vm146_vm8 = vcmp.eq.s32.totalorder %v1706_v23, %v1255_v46 }
  0x85   :  { %v520_v7 = vsel %vm295_vm2, %v1258_v47, %v445_v4  ;;  %v522_v8 = vsel %vm297_vm3, %v1258_v47, %v447_v6  ;;  %vm220_vm9 = vcmp.eq.s32.totalorder %v1706_v23, %v1286_v56  ;;  %vm294_vm10 = vcmp.eq.s32.totalorder %v1706_v23, %v1304_v58 }
  0x86   :  { %1019 = vmatpush1.bf16.msra.mxu0 %v1018_v5  ;;  %1078 = vmatpush1.bf16.msra.mxu1 %v1018_v5  ;;  %v595_v42 = vsel %vm221_vm1, %v1261_v48, %v520_v7  ;;  %v597_v9 = vsel %vm223_vm5, %v1261_v48, %v522_v8  ;;  %vm296_vm11 = vcmp.eq.s32.totalorder %v1742_v37, %v1304_v58  ;;  %v1838_v18 = vadd.s32 144, %v1222_v19 }
  0x87   :  { %v670_v11 = vsel %vm147_vm15, %v1264_v49, %v595_v42  ;;  %v672_v41 = vsel %vm149_vm7, %v1264_v49, %v597_v9  ;;  %vm368_vm12 = vcmp.eq.s32.totalorder %v1706_v23, %v1311_v59  ;;  %vm222_vm13 = vcmp.eq.s32.totalorder %v1742_v37, %v1286_v56 }
  0x88   :  { %v1020_v12 = vpack.c.bf16 %v672_v41, %v670_v11  ;;  %vm370_vm14 = vcmp.eq.s32.totalorder %v1742_v37, %v1311_v59  ;;  %v444_v13 = vsel %vm368_vm12, %v1243_v40, 0.0  ;;  %vm148_vm0 = vcmp.eq.s32.totalorder %v1742_v37, %v1255_v46 }
  0x89   :  { %v446_v14 = vsel %vm370_vm14, %v1243_v40, 0.0  ;;  %v519_v15 = vsel %vm294_vm10, %v1267_v50, %v444_v13  ;;  %vm151_vm15 = vcmp.eq.s32.totalorder %v1772_v0, %v1252_v43  ;;  %vm225_vm1 = vcmp.eq.s32.totalorder %v1772_v0, %v1270_v51 }
  0x8a   :  { %1021 = vmatprep.subr.bf16.mxu0 %v1020_v12  ;;  %1063 = vmatprep.subr.bf16.mxu1 %v1020_v12  ;;  %v521_v16 = vsel %vm296_vm11, %v1267_v50, %v446_v14  ;;  %v594_v17 = vsel %vm220_vm9, %v1276_v53, %v519_v15  ;;  %vm299_vm2 = vcmp.eq.s32.totalorder %v1772_v0, %v1273_v52  ;;  %v1874_v32 = vadd.s32 152, %v1222_v19 }
  0x8b   :  { %v596_v20 = vsel %vm222_vm13, %v1276_v53, %v521_v16  ;;  %v669_v21 = vsel %vm146_vm8, %v1279_v54, %v594_v17  ;;  %vm301_vm3 = vcmp.eq.s32.totalorder %v1808_v10, %v1273_v52  ;;  %vm227_vm5 = vcmp.eq.s32.totalorder %v1808_v10, %v1270_v51 }
  0x8c   :  { %v671_v22 = vsel %vm148_vm0, %v1279_v54, %v596_v20  ;;  %vm373_vm4 = vcmp.eq.s32.totalorder %v1772_v0, %v1301_v57  ;;  %vm375_vm6 = vcmp.eq.s32.totalorder %v1808_v10, %v1301_v57  ;;  %vm153_vm7 = vcmp.eq.s32.totalorder %v1808_v10, %v1252_v43 }
  0x8d   :  { %v1022_v24 = vpack.c.bf16 %v671_v22, %v669_v21  ;;  %v449_v23 = vsel %vm373_vm4, %v1240_v39, 0.0  ;;  %v451_v25 = vsel %vm375_vm6, %v1240_v39, 0.0  ;;  %vm150_vm8 = vcmp.eq.s32.totalorder %v1772_v0, %v1255_v46 }
  0x8e   :  { %v524_v26 = vsel %vm299_vm2, %v1258_v47, %v449_v23  ;;  %v526_v29 = vsel %vm301_vm3, %v1258_v47, %v451_v25  ;;  %vm224_vm9 = vcmp.eq.s32.totalorder %v1772_v0, %v1286_v56  ;;  %vm298_vm10 = vcmp.eq.s32.totalorder %v1772_v0, %v1304_v58 }
  0x8f   :  { %1023 = vmatpush1.bf16.msra.mxu0 %v1022_v24  ;;  %1079 = vmatpush1.bf16.msra.mxu1 %v1022_v24  ;;  %v599_v27 = vsel %vm225_vm1, %v1261_v48, %v524_v26  ;;  %v601_v31 = vsel %vm227_vm5, %v1261_v48, %v526_v29  ;;  %vm300_vm11 = vcmp.eq.s32.totalorder %v1808_v10, %v1304_v58  ;;  %v1904_v60 = vadd.s32 160, %v1222_v19 }
  0x90   :  { %v674_v33 = vsel %vm151_vm15, %v1264_v49, %v599_v27  ;;  %v676_v34 = vsel %vm153_vm7, %v1264_v49, %v601_v31  ;;  %vm372_vm12 = vcmp.eq.s32.totalorder %v1772_v0, %v1311_v59  ;;  %vm226_vm13 = vcmp.eq.s32.totalorder %v1808_v10, %v1286_v56 }
  0x91   :  { %v1024_v35 = vpack.c.bf16 %v676_v34, %v674_v33  ;;  %vm374_vm14 = vcmp.eq.s32.totalorder %v1808_v10, %v1311_v59  ;;  %v448_v37 = vsel %vm372_vm12, %v1243_v40, 0.0  ;;  %vm152_vm0 = vcmp.eq.s32.totalorder %v1808_v10, %v1255_v46 }
  0x92   :  { %v450_v38 = vsel %vm374_vm14, %v1243_v40, 0.0  ;;  %v523_v44 = vsel %vm298_vm10, %v1267_v50, %v448_v37  ;;  %vm155_vm15 = vcmp.eq.s32.totalorder %v1838_v18, %v1252_v43  ;;  %vm229_vm1 = vcmp.eq.s32.totalorder %v1838_v18, %v1270_v51 }
  0x93   :  { %1025 = vmatprep.subr.bf16.mxu0 %v1024_v35  ;;  %1064 = vmatprep.subr.bf16.mxu1 %v1024_v35  ;;  %v525_v45 = vsel %vm300_vm11, %v1267_v50, %v450_v38  ;;  %v598_v55 = vsel %vm224_vm9, %v1276_v53, %v523_v44  ;;  %vm303_vm2 = vcmp.eq.s32.totalorder %v1838_v18, %v1273_v52  ;;  %v1940_v7 = vadd.s32 168, %v1222_v19 }
  0x94   :  { %v600_v61 = vsel %vm226_vm13, %v1276_v53, %v525_v45  ;;  %v673_v62 = vsel %vm150_vm8, %v1279_v54, %v598_v55  ;;  %vm305_vm3 = vcmp.eq.s32.totalorder %v1874_v32, %v1273_v52  ;;  %vm231_vm5 = vcmp.eq.s32.totalorder %v1874_v32, %v1270_v51 }
  0x95   :  { %v675_v63 = vsel %vm152_vm0, %v1279_v54, %v600_v61  ;;  %vm377_vm4 = vcmp.eq.s32.totalorder %v1838_v18, %v1301_v57  ;;  %vm379_vm6 = vcmp.eq.s32.totalorder %v1874_v32, %v1301_v57  ;;  %vm157_vm7 = vcmp.eq.s32.totalorder %v1874_v32, %v1252_v43 }
  0x96   :  { %v1026_v1 = vpack.c.bf16 %v675_v63, %v673_v62  ;;  %v453_v0 = vsel %vm377_vm4, %v1240_v39, 0.0  ;;  %v455_v2 = vsel %vm379_vm6, %v1240_v39, 0.0  ;;  %vm154_vm8 = vcmp.eq.s32.totalorder %v1838_v18, %v1255_v46 }
  0x97   :  { %v528_v3 = vsel %vm303_vm2, %v1258_v47, %v453_v0  ;;  %v530_v5 = vsel %vm305_vm3, %v1258_v47, %v455_v2  ;;  %vm228_vm9 = vcmp.eq.s32.totalorder %v1838_v18, %v1286_v56  ;;  %vm302_vm10 = vcmp.eq.s32.totalorder %v1838_v18, %v1304_v58 }
  0x98   :  { %1027 = vmatpush1.bf16.msra.mxu0 %v1026_v1  ;;  %1080 = vmatpush1.bf16.msra.mxu1 %v1026_v1  ;;  %v603_v4 = vsel %vm229_vm1, %v1261_v48, %v528_v3  ;;  %v605_v6 = vsel %vm231_vm5, %v1261_v48, %v530_v5  ;;  %vm304_vm11 = vcmp.eq.s32.totalorder %v1874_v32, %v1304_v58  ;;  %v1970_v14 = vadd.s32 176, %v1222_v19 }
  0x99   :  { %v678_v8 = vsel %vm155_vm15, %v1264_v49, %v603_v4  ;;  %v680_v42 = vsel %vm157_vm7, %v1264_v49, %v605_v6  ;;  %vm376_vm12 = vcmp.eq.s32.totalorder %v1838_v18, %v1311_v59  ;;  %vm230_vm13 = vcmp.eq.s32.totalorder %v1874_v32, %v1286_v56 }
  0x9a   :  { %v1028_v9 = vpack.c.bf16 %v680_v42, %v678_v8  ;;  %vm378_vm14 = vcmp.eq.s32.totalorder %v1874_v32, %v1311_v59  ;;  %v452_v10 = vsel %vm376_vm12, %v1243_v40, 0.0  ;;  %vm156_vm0 = vcmp.eq.s32.totalorder %v1874_v32, %v1255_v46 }
  0x9b   :  { %v454_v11 = vsel %vm378_vm14, %v1243_v40, 0.0  ;;  %v527_v41 = vsel %vm302_vm10, %v1267_v50, %v452_v10  ;;  %vm159_vm15 = vcmp.eq.s32.totalorder %v1904_v60, %v1252_v43  ;;  %vm233_vm1 = vcmp.eq.s32.totalorder %v1904_v60, %v1270_v51 }
  0x9c   :  { %1029 = vmatprep.subr.bf16.mxu0 %v1028_v9  ;;  %1065 = vmatprep.subr.bf16.mxu1 %v1028_v9  ;;  %v529_v12 = vsel %vm304_vm11, %v1267_v50, %v454_v11  ;;  %v602_v13 = vsel %vm228_vm9, %v1276_v53, %v527_v41  ;;  %vm307_vm2 = vcmp.eq.s32.totalorder %v1904_v60, %v1273_v52  ;;  %v2006_v26 = vadd.s32 184, %v1222_v19 }
  0x9d   :  { %v604_v15 = vsel %vm230_vm13, %v1276_v53, %v529_v12  ;;  %v677_v16 = vsel %vm154_vm8, %v1279_v54, %v602_v13  ;;  %vm309_vm3 = vcmp.eq.s32.totalorder %v1940_v7, %v1273_v52  ;;  %vm235_vm5 = vcmp.eq.s32.totalorder %v1940_v7, %v1270_v51 }
  0x9e   :  { %v679_v17 = vsel %vm156_vm0, %v1279_v54, %v604_v15  ;;  %vm381_vm4 = vcmp.eq.s32.totalorder %v1904_v60, %v1301_v57  ;;  %vm383_vm6 = vcmp.eq.s32.totalorder %v1940_v7, %v1301_v57  ;;  %vm161_vm7 = vcmp.eq.s32.totalorder %v1940_v7, %v1252_v43 }
  0x9f   :  { %v1030_v20 = vpack.c.bf16 %v679_v17, %v677_v16  ;;  %v457_v18 = vsel %vm381_vm4, %v1240_v39, 0.0  ;;  %v459_v21 = vsel %vm383_vm6, %v1240_v39, 0.0  ;;  %vm158_vm8 = vcmp.eq.s32.totalorder %v1904_v60, %v1255_v46 }
  0xa0   :  { %v532_v22 = vsel %vm307_vm2, %v1258_v47, %v457_v18  ;;  %v534_v24 = vsel %vm309_vm3, %v1258_v47, %v459_v21  ;;  %vm232_vm9 = vcmp.eq.s32.totalorder %v1904_v60, %v1286_v56  ;;  %vm306_vm10 = vcmp.eq.s32.totalorder %v1904_v60, %v1304_v58 }
  0xa1   :  { %1031 = vmatpush1.bf16.msra.mxu0 %v1030_v20  ;;  %1081 = vmatpush1.bf16.msra.mxu1 %v1030_v20  ;;  %v607_v23 = vsel %vm233_vm1, %v1261_v48, %v532_v22  ;;  %v609_v25 = vsel %vm235_vm5, %v1261_v48, %v534_v24  ;;  %vm308_vm11 = vcmp.eq.s32.totalorder %v1940_v7, %v1304_v58  ;;  %v2036_v38 = vadd.s32 192, %v1222_v19 }
  0xa2   :  { %v682_v29 = vsel %vm159_vm15, %v1264_v49, %v607_v23  ;;  %v684_v27 = vsel %vm161_vm7, %v1264_v49, %v609_v25  ;;  %vm380_vm12 = vcmp.eq.s32.totalorder %v1904_v60, %v1311_v59  ;;  %vm234_vm13 = vcmp.eq.s32.totalorder %v1940_v7, %v1286_v56 }
  0xa3   :  { %v1032_v31 = vpack.c.bf16 %v684_v27, %v682_v29  ;;  %vm382_vm14 = vcmp.eq.s32.totalorder %v1940_v7, %v1311_v59  ;;  %v456_v32 = vsel %vm380_vm12, %v1243_v40, 0.0  ;;  %vm160_vm0 = vcmp.eq.s32.totalorder %v1940_v7, %v1255_v46 }
  0xa4   :  { %v458_v33 = vsel %vm382_vm14, %v1243_v40, 0.0  ;;  %v531_v34 = vsel %vm306_vm10, %v1267_v50, %v456_v32  ;;  %vm163_vm15 = vcmp.eq.s32.totalorder %v1970_v14, %v1252_v43  ;;  %vm237_vm1 = vcmp.eq.s32.totalorder %v1970_v14, %v1270_v51 }
  0xa5   :  { %1033 = vmatprep.subr.bf16.mxu0 %v1032_v31  ;;  %1066 = vmatprep.subr.bf16.mxu1 %v1032_v31  ;;  %v533_v35 = vsel %vm308_vm11, %v1267_v50, %v458_v33  ;;  %v606_v37 = vsel %vm232_vm9, %v1276_v53, %v531_v34  ;;  %vm311_vm2 = vcmp.eq.s32.totalorder %v1970_v14, %v1273_v52  ;;  %v2072_v3 = vadd.s32 200, %v1222_v19 }
  0xa6   :  { %v608_v44 = vsel %vm234_vm13, %v1276_v53, %v533_v35  ;;  %v681_v45 = vsel %vm158_vm8, %v1279_v54, %v606_v37  ;;  %vm313_vm3 = vcmp.eq.s32.totalorder %v2006_v26, %v1273_v52  ;;  %vm239_vm5 = vcmp.eq.s32.totalorder %v2006_v26, %v1270_v51 }
  0xa7   :  { %v683_v55 = vsel %vm160_vm0, %v1279_v54, %v608_v44  ;;  %vm385_vm4 = vcmp.eq.s32.totalorder %v1970_v14, %v1301_v57  ;;  %vm387_vm6 = vcmp.eq.s32.totalorder %v2006_v26, %v1301_v57  ;;  %vm165_vm7 = vcmp.eq.s32.totalorder %v2006_v26, %v1252_v43 }
  0xa8   :  { %v1034_v61 = vpack.c.bf16 %v683_v55, %v681_v45  ;;  %v461_v60 = vsel %vm385_vm4, %v1240_v39, 0.0  ;;  %v463_v62 = vsel %vm387_vm6, %v1240_v39, 0.0  ;;  %vm162_vm8 = vcmp.eq.s32.totalorder %v1970_v14, %v1255_v46 }
  0xa9   :  { %v536_v63 = vsel %vm311_vm2, %v1258_v47, %v461_v60  ;;  %v538_v1 = vsel %vm313_vm3, %v1258_v47, %v463_v62  ;;  %vm236_vm9 = vcmp.eq.s32.totalorder %v1970_v14, %v1286_v56  ;;  %vm310_vm10 = vcmp.eq.s32.totalorder %v1970_v14, %v1304_v58 }
  0xaa   :  { %1035 = vmatpush1.bf16.msra.mxu0 %v1034_v61  ;;  %1082 = vmatpush1.bf16.msra.mxu1 %v1034_v61  ;;  %v611_v0 = vsel %vm237_vm1, %v1261_v48, %v536_v63  ;;  %v613_v2 = vsel %vm239_vm5, %v1261_v48, %v538_v1  ;;  %vm312_vm11 = vcmp.eq.s32.totalorder %v2006_v26, %v1304_v58  ;;  %v2102_v11 = vadd.s32 208, %v1222_v19 }
  0xab   :  { %v686_v5 = vsel %vm163_vm15, %v1264_v49, %v611_v0  ;;  %v688_v4 = vsel %vm165_vm7, %v1264_v49, %v613_v2  ;;  %vm384_vm12 = vcmp.eq.s32.totalorder %v1970_v14, %v1311_v59  ;;  %vm238_vm13 = vcmp.eq.s32.totalorder %v2006_v26, %v1286_v56 }
  0xac   :  { %v1036_v6 = vpack.c.bf16 %v688_v4, %v686_v5  ;;  %vm386_vm14 = vcmp.eq.s32.totalorder %v2006_v26, %v1311_v59  ;;  %v460_v7 = vsel %vm384_vm12, %v1243_v40, 0.0  ;;  %vm164_vm0 = vcmp.eq.s32.totalorder %v2006_v26, %v1255_v46 }
  0xad   :  { %v462_v8 = vsel %vm386_vm14, %v1243_v40, 0.0  ;;  %v535_v42 = vsel %vm310_vm10, %v1267_v50, %v460_v7  ;;  %vm167_vm15 = vcmp.eq.s32.totalorder %v2036_v38, %v1252_v43  ;;  %vm241_vm1 = vcmp.eq.s32.totalorder %v2036_v38, %v1270_v51 }
  0xae   :  { %1037 = vmatprep.subr.bf16.mxu0 %v1036_v6  ;;  %1067 = vmatprep.subr.bf16.mxu1 %v1036_v6  ;;  %v537_v9 = vsel %vm312_vm11, %v1267_v50, %v462_v8  ;;  %v610_v10 = vsel %vm236_vm9, %v1276_v53, %v535_v42  ;;  %vm315_vm2 = vcmp.eq.s32.totalorder %v2036_v38, %v1273_v52  ;;  %v2138_v22 = vadd.s32 216, %v1222_v19 }
  0xaf   :  { %v612_v41 = vsel %vm238_vm13, %v1276_v53, %v537_v9  ;;  %v685_v12 = vsel %vm162_vm8, %v1279_v54, %v610_v10  ;;  %vm317_vm3 = vcmp.eq.s32.totalorder %v2072_v3, %v1273_v52  ;;  %vm243_vm5 = vcmp.eq.s32.totalorder %v2072_v3, %v1270_v51 }
  0xb0   :  { %v687_v13 = vsel %vm164_vm0, %v1279_v54, %v612_v41  ;;  %vm389_vm4 = vcmp.eq.s32.totalorder %v2036_v38, %v1301_v57  ;;  %vm391_vm6 = vcmp.eq.s32.totalorder %v2072_v3, %v1301_v57  ;;  %vm169_vm7 = vcmp.eq.s32.totalorder %v2072_v3, %v1252_v43 }
  0xb1   :  { %v1038_v15 = vpack.c.bf16 %v687_v13, %v685_v12  ;;  %v465_v14 = vsel %vm389_vm4, %v1240_v39, 0.0  ;;  %v467_v16 = vsel %vm391_vm6, %v1240_v39, 0.0  ;;  %vm166_vm8 = vcmp.eq.s32.totalorder %v2036_v38, %v1255_v46 }
  0xb2   :  { %v540_v17 = vsel %vm315_vm2, %v1258_v47, %v465_v14  ;;  %v542_v20 = vsel %vm317_vm3, %v1258_v47, %v467_v16  ;;  %vm240_vm9 = vcmp.eq.s32.totalorder %v2036_v38, %v1286_v56  ;;  %vm314_vm10 = vcmp.eq.s32.totalorder %v2036_v38, %v1304_v58 }
  0xb3   :  { %1039 = vmatpush1.bf16.msra.mxu0 %v1038_v15  ;;  %1083 = vmatpush1.bf16.msra.mxu1 %v1038_v15  ;;  %v615_v18 = vsel %vm241_vm1, %v1261_v48, %v540_v17  ;;  %v617_v21 = vsel %vm243_vm5, %v1261_v48, %v542_v20  ;;  %vm316_vm11 = vcmp.eq.s32.totalorder %v2072_v3, %v1304_v58  ;;  %v2168_v33 = vadd.s32 224, %v1222_v19 }
  0xb4   :  { %v690_v24 = vsel %vm167_vm15, %v1264_v49, %v615_v18  ;;  %v692_v23 = vsel %vm169_vm7, %v1264_v49, %v617_v21  ;;  %vm388_vm12 = vcmp.eq.s32.totalorder %v2036_v38, %v1311_v59  ;;  %vm242_vm13 = vcmp.eq.s32.totalorder %v2072_v3, %v1286_v56 }
  0xb5   :  { %v1040_v25 = vpack.c.bf16 %v692_v23, %v690_v24  ;;  %vm390_vm14 = vcmp.eq.s32.totalorder %v2072_v3, %v1311_v59  ;;  %v464_v26 = vsel %vm388_vm12, %v1243_v40, 0.0  ;;  %vm168_vm0 = vcmp.eq.s32.totalorder %v2072_v3, %v1255_v46 }
  0xb6   :  { %v466_v29 = vsel %vm390_vm14, %v1243_v40, 0.0  ;;  %v539_v27 = vsel %vm314_vm10, %v1267_v50, %v464_v26  ;;  %vm171_vm15 = vcmp.eq.s32.totalorder %v2102_v11, %v1252_v43  ;;  %vm245_vm1 = vcmp.eq.s32.totalorder %v2102_v11, %v1270_v51 }
  0xb7   :  { %1041 = vmatprep.subr.bf16.mxu0 %v1040_v25  ;;  %1068 = vmatprep.subr.bf16.mxu1 %v1040_v25  ;;  %v541_v31 = vsel %vm316_vm11, %v1267_v50, %v466_v29  ;;  %v614_v32 = vsel %vm240_vm9, %v1276_v53, %v539_v27  ;;  %vm319_vm2 = vcmp.eq.s32.totalorder %v2102_v11, %v1273_v52  ;;  %v2204_v63 = vadd.s32 232, %v1222_v19 }
  0xb8   :  { %v616_v34 = vsel %vm242_vm13, %v1276_v53, %v541_v31  ;;  %v689_v35 = vsel %vm166_vm8, %v1279_v54, %v614_v32  ;;  %vm321_vm3 = vcmp.eq.s32.totalorder %v2138_v22, %v1273_v52  ;;  %vm247_vm5 = vcmp.eq.s32.totalorder %v2138_v22, %v1270_v51 }
  0xb9   :  { %v691_v37 = vsel %vm168_vm0, %v1279_v54, %v616_v34  ;;  %vm393_vm4 = vcmp.eq.s32.totalorder %v2102_v11, %v1301_v57  ;;  %vm395_vm6 = vcmp.eq.s32.totalorder %v2138_v22, %v1301_v57  ;;  %vm173_vm7 = vcmp.eq.s32.totalorder %v2138_v22, %v1252_v43 }
  0xba   :  { %v1042_v44 = vpack.c.bf16 %v691_v37, %v689_v35  ;;  %v469_v38 = vsel %vm393_vm4, %v1240_v39, 0.0  ;;  %v471_v45 = vsel %vm395_vm6, %v1240_v39, 0.0  ;;  %vm170_vm8 = vcmp.eq.s32.totalorder %v2102_v11, %v1255_v46 }
  0xbb   :  { %v544_v55 = vsel %vm319_vm2, %v1258_v47, %v469_v38  ;;  %v546_v61 = vsel %vm321_vm3, %v1258_v47, %v471_v45  ;;  %vm244_vm9 = vcmp.eq.s32.totalorder %v2102_v11, %v1286_v56  ;;  %vm318_vm10 = vcmp.eq.s32.totalorder %v2102_v11, %v1304_v58 }
  0xbc   :  { %1043 = vmatpush1.bf16.msra.mxu0 %v1042_v44  ;;  %1084 = vmatpush1.bf16.msra.mxu1 %v1042_v44  ;;  %v619_v60 = vsel %vm245_vm1, %v1261_v48, %v544_v55  ;;  %v621_v62 = vsel %vm247_vm5, %v1261_v48, %v546_v61  ;;  %vm320_vm11 = vcmp.eq.s32.totalorder %v2138_v22, %v1304_v58  ;;  %v2234_v8 = vadd.s32 240, %v1222_v19  ;;  %v705_v55 = vld [vmem:[#allocation5] sm:$0xff] }
  0xbd   :  { %v694_v1 = vsel %vm171_vm15, %v1264_v49, %v619_v60  ;;  %v696_v0 = vsel %vm173_vm7, %v1264_v49, %v621_v62  ;;  %vm392_vm12 = vcmp.eq.s32.totalorder %v2102_v11, %v1311_v59  ;;  %vm246_vm13 = vcmp.eq.s32.totalorder %v2138_v22, %v1286_v56  ;;  %v713_v61 = vld [vmem:[#allocation5 + $0x40] sm:$0xff]  ;;  %v716_v60 = vld [vmem:[#allocation5 + $0x58] sm:$0xff]  ;;  %v710_v62 = vld [vmem:[#allocation5 + $0x28] sm:$0xff] }
  0xbe   :  { %v1044_v2 = vpack.c.bf16 %v696_v0, %v694_v1  ;;  %vm394_vm14 = vcmp.eq.s32.totalorder %v2138_v22, %v1311_v59  ;;  %v468_v3 = vsel %vm392_vm12, %v1243_v40, 0.0  ;;  %vm172_vm0 = vcmp.eq.s32.totalorder %v2138_v22, %v1255_v46  ;;  %v712_v1 = vld [vmem:[#allocation5 + $0x38] sm:$0xff] }
  0xbf   :  { %v470_v5 = vsel %vm394_vm14, %v1243_v40, 0.0  ;;  %v543_v4 = vsel %vm318_vm10, %v1267_v50, %v468_v3  ;;  %vm175_vm15 = vcmp.eq.s32.totalorder %v2168_v33, %v1252_v43  ;;  %vm249_vm1 = vcmp.eq.s32.totalorder %v2168_v33, %v1270_v51  ;;  %v720_v0 = vld [vmem:[#allocation5 + $0x78] sm:$0xff]  ;;  %v719_v3 = vld [vmem:[#allocation5 + $0x70] sm:$0xff] }
  0xc0   :  { %1045 = vmatprep.subr.bf16.mxu0 %v1044_v2  ;;  %1069 = vmatprep.subr.bf16.mxu1 %v1044_v2  ;;  %v545_v6 = vsel %vm320_vm11, %v1267_v50, %v470_v5  ;;  %v618_v7 = vsel %vm244_vm9, %v1276_v53, %v543_v4  ;;  %vm323_vm2 = vcmp.eq.s32.totalorder %v2168_v33, %v1273_v52  ;;  %v107_v17 = vadd.s32 248, %v1222_v19  ;;  %v711_v2 = vld [vmem:[#allocation5 + $0x30] sm:$0xff]  ;;  %v38_v5 = vld [vmem:[#allocation2] ss:$4 sm:$0x3] }
  0xc1   :  { %v620_v42 = vsel %vm246_vm13, %v1276_v53, %v545_v6  ;;  %v693_v9 = vsel %vm170_vm8, %v1279_v54, %v618_v7  ;;  %vm325_vm3 = vcmp.eq.s32.totalorder %v2204_v63, %v1273_v52  ;;  %vm251_vm5 = vcmp.eq.s32.totalorder %v2204_v63, %v1270_v51 }
  0xc2   :  { %v695_v10 = vsel %vm172_vm0, %v1279_v54, %v620_v42  ;;  %vm397_vm4 = vcmp.eq.s32.totalorder %v2168_v33, %v1301_v57  ;;  %vm399_vm6 = vcmp.eq.s32.totalorder %v2204_v63, %v1301_v57  ;;  %vm177_vm7 = vcmp.eq.s32.totalorder %v2204_v63, %v1252_v43 }
  0xc3   :  { %v1046_v41 = vpack.c.bf16 %v695_v10, %v693_v9  ;;  %v473_v11 = vsel %vm397_vm4, %v1240_v39, 0.0  ;;  %v475_v12 = vsel %vm399_vm6, %v1240_v39, 0.0  ;;  %vm174_vm8 = vcmp.eq.s32.totalorder %v2168_v33, %v1255_v46 }
  0xc4   :  { %v548_v13 = vsel %vm323_vm2, %v1258_v47, %v473_v11  ;;  %v550_v15 = vsel %vm325_vm3, %v1258_v47, %v475_v12  ;;  %vm248_vm9 = vcmp.eq.s32.totalorder %v2168_v33, %v1286_v56  ;;  %vm322_vm10 = vcmp.eq.s32.totalorder %v2168_v33, %v1304_v58 }
  0xc5   :  { %1047 = vmatpush1.bf16.msra.mxu0 %v1046_v41  ;;  %1085 = vmatpush1.bf16.msra.mxu1 %v1046_v41  ;;  %v623_v14 = vsel %vm249_vm1, %v1261_v48, %v548_v13  ;;  %v625_v16 = vsel %vm251_vm5, %v1261_v48, %v550_v15  ;;  %vm324_vm11 = vcmp.eq.s32.totalorder %v2204_v63, %v1304_v58  ;;  %v39_v4 = vadd.f32 1.0, %v38_v5 }
  0xc6   :  { %v698_v20 = vsel %vm175_vm15, %v1264_v49, %v623_v14  ;;  %v700_v18 = vsel %vm177_vm7, %v1264_v49, %v625_v16  ;;  %vm396_vm12 = vcmp.eq.s32.totalorder %v2168_v33, %v1311_v59  ;;  %vm250_vm13 = vcmp.eq.s32.totalorder %v2204_v63, %v1286_v56 }
  0xc7   :  { %v1048_v21 = vpack.c.bf16 %v700_v18, %v698_v20  ;;  %vm398_vm14 = vcmp.eq.s32.totalorder %v2204_v63, %v1311_v59  ;;  %v472_v22 = vsel %vm396_vm12, %v1243_v40, 0.0  ;;  %vm176_vm0 = vcmp.eq.s32.totalorder %v2204_v63, %v1255_v46  ;;  %v718_v63 = vld [vmem:[#allocation5 + $0x68] sm:$0xff] }
  0xc8   :  { %v474_v24 = vsel %vm398_vm14, %v1243_v40, 0.0  ;;  %v547_v23 = vsel %vm322_vm10, %v1267_v50, %v472_v22  ;;  %vm179_vm15 = vcmp.eq.s32.totalorder %v2234_v8, %v1252_v43  ;;  %vm253_vm1 = vcmp.eq.s32.totalorder %v2234_v8, %v1270_v51 }
  0xc9   :  { %1049 = vmatprep.subr.bf16.mxu0 %v1048_v21  ;;  %1070 = vmatprep.subr.bf16.mxu1 %v1048_v21  ;;  %v549_v25 = vsel %vm324_vm11, %v1267_v50, %v474_v24  ;;  %v622_v26 = vsel %vm248_vm9, %v1276_v53, %v547_v23  ;;  %vm327_vm2 = vcmp.eq.s32.totalorder %v2234_v8, %v1273_v52  ;;  %v40_v6 = vmul.f32 0.5, %v39_v4 }
  0xca   :  { %v624_v29 = vsel %vm250_vm13, %v1276_v53, %v549_v25  ;;  %v697_v27 = vsel %vm174_vm8, %v1279_v54, %v622_v26  ;;  %vm329_vm3 = vcmp.eq.s32.totalorder %v107_v17, %v1273_v52  ;;  %vm255_vm5 = vcmp.eq.s32.totalorder %v107_v17, %v1270_v51 }
  0xcb   :  { %v699_v31 = vsel %vm176_vm0, %v1279_v54, %v624_v29  ;;  %vm401_vm4 = vcmp.eq.s32.totalorder %v2234_v8, %v1301_v57  ;;  %vm403_vm6 = vcmp.eq.s32.totalorder %v107_v17, %v1301_v57  ;;  %vm181_vm7 = vcmp.eq.s32.totalorder %v107_v17, %v1252_v43 }
  0xcc   :  { %v1050_v32 = vpack.c.bf16 %v699_v31, %v697_v27  ;;  %v477_v33 = vsel %vm401_vm4, %v1240_v39, 0.0  ;;  %v479_v34 = vsel %vm403_vm6, %v1240_v39, 0.0  ;;  %vm178_vm8 = vcmp.eq.s32.totalorder %v2234_v8, %v1255_v46 }
  0xcd   :  { %v552_v35 = vsel %vm327_vm2, %v1258_v47, %v477_v33  ;;  %v554_v52 = vsel %vm329_vm3, %v1258_v47, %v479_v34  ;;  %vm252_vm9 = vcmp.eq.s32.totalorder %v2234_v8, %v1286_v56  ;;  %vm326_vm10 = vcmp.eq.s32.totalorder %v2234_v8, %v1304_v58 }
  0xce   :  { %1051 = vmatpush1.bf16.msra.mxu0 %v1050_v32  ;;  %1086 = vmatpush1.bf16.msra.mxu1 %v1050_v32  ;;  %v627_v57 = vsel %vm253_vm1, %v1261_v48, %v552_v35  ;;  %v629_v37 = vsel %vm255_vm5, %v1261_v48, %v554_v52  ;;  %vm328_vm11 = vcmp.eq.s32.totalorder %v107_v17, %v1304_v58  ;;  %v41_v7 = vmul.f32 15.0, %v40_v6 }
  0xcf   :  { %v702_v39 = vsel %vm179_vm15, %v1264_v49, %v627_v57  ;;  %v704_v47 = vsel %vm181_vm7, %v1264_v49, %v629_v37  ;;  %vm400_vm12 = vcmp.eq.s32.totalorder %v2234_v8, %v1311_v59  ;;  %vm254_vm13 = vcmp.eq.s32.totalorder %v107_v17, %v1286_v56  ;;  %v707_v56 = vld [vmem:[#allocation5 + $0x10] sm:$0xff] }
  0xd0   :  { %v1052_v44 = vpack.c.bf16 %v704_v47, %v702_v39  ;;  %vm402_vm14 = vcmp.eq.s32.totalorder %v107_v17, %v1311_v59  ;;  %v476_v48 = vsel %vm400_vm12, %v1243_v40, 0.0  ;;  %vm180_vm0 = vcmp.eq.s32.totalorder %v107_v17, %v1255_v46  ;;  %v709_v46 = vld [vmem:[#allocation5 + $0x20] sm:$0xff] }
  0xd1   :  { %v478_v51 = vsel %vm402_vm14, %v1243_v40, 0.0  ;;  %v551_v43 = vsel %vm326_vm10, %v1267_v50, %v476_v48  ;;  %v42_v8 = vmax.f32 %v41_v7, 0.0  ;;  %vm968_vm10 = vcmask 1042432  }
  0xd2   :  { %1053 = vmatprep.subr.bf16.mxu0 %v1052_v44  ;;  %1071 = vmatprep.subr.bf16.mxu1 %v1052_v44  ;;  %v553_v49 = vsel %vm328_vm11, %v1267_v50, %v478_v51  ;;  %v626_v58 = vsel %vm252_vm9, %v1276_v53, %v551_v43  ;;  %v708_v50 = vld [vmem:[#allocation5 + $0x18] sm:$0xff]  ;;  %vm965_vm9 = vcmask 1041408  }
  0xd3   :  { %v628_v38 = vsel %vm254_vm13, %v1276_v53, %v553_v49  ;;  %v701_v59 = vsel %vm178_vm8, %v1279_v54, %v626_v58  ;;  %v715_v53 = vld [vmem:[#allocation5 + $0x50] sm:$0xff]  ;;  %v43_v42 = vmin.f32 %v42_v8, 15.0  ;;  %vm962_vm8 = vcmask 1040384  }
  0xd4   :  { %v703_v40 = vsel %vm180_vm0, %v1279_v54, %v628_v38  ;;  %v717_v54 = vld [vmem:[#allocation5 + $0x60] sm:$0xff] }
  0xd5   :  { %v1054_v45 = vpack.c.bf16 %v703_v40, %v701_v59  ;;  %v44_v9 = vfloor.f32 %v43_v42 }
  0xd7   :  { %1055 = vmatpush1.bf16.msra.mxu0 %v1054_v45  ;;  %1087 = vmatpush1.bf16.msra.mxu1 %v1054_v45  ;;  %v45_v10 = vmax.f32 %v44_v9, 0.0 }
  0xd9   :  { %v46_v41 = vmin.f32 %v45_v10, 14.0 }
  0xda   :  { %786 = vmatmul.mubr.f32.vlgmr.msra.gmra.mrb[0].mxu0 %v705_v55  ;;  %810 = vmatmul.mubr.f32.vlgmr.msra.gmra.mrb[0].mxu1 %v713_v61 }
  0xdb   :  { %791 = vmatprep.mubr.f32.mxu0 %v708_v50  ;;  %815 = vmatprep.mubr.f32.mxu1 %v716_v60  ;;  %v1088_v11 = vtrunc.f32 %v46_v41  ;;  %v48_v15 = vsub.f32 %v43_v42, %v46_v41 }
  0xdd   :  { %v1089_v12 = vcvt.f32.s32 %v1088_v11  ;;  %v846_v20 = vsub.f32 1.0, %v48_v15  ;;  %v864_v18 = vrot.slane %v48_v15, %v1228_v30  ;;  %v868_v22 = vrot.slane %v48_v15, %v1225_v28 }
  0xde   :  { %792 = vmatmul.mubr.f32.gmra.mrb[2].mxu0 %v707_v56  ;;  %816 = vmatmul.mubr.f32.gmra.mrb[2].mxu1 %v715_v53 }
  0xdf   :  { %797 = vmatprep.mubr.f32.mxu0 %v710_v62  ;;  %821 = vmatprep.mubr.f32.mxu1 %v718_v63  ;;  %v847_v13 = vadd.s32 1, %v1089_v12  ;;  %v837_v17 = vrot.slane %v1089_v12, %v1228_v30  ;;  %v841_v21 = vrot.slane %v1089_v12, %v1225_v28  ;;  %v879_v24 = vrot.slane %v846_v20, %v1228_v30 }
  0xe0   :  { %v883_v25 = vrot.slane %v846_v20, %v1225_v28 }
  0xe1   :  { %v851_v14 = vrot.slane %v847_v13, %v1228_v30  ;;  %v855_v16 = vrot.slane %v847_v13, %v1225_v28  ;;  %vm842_vm5 = vcmp.eq.s32.totalorder %v1222_v19, %v837_v17  ;;  %vm844_vm4 = vcmp.eq.s32.totalorder %v1231_v36, %v837_v17 }
  0xe2   :  { %798 = vmatmul.mubr.f32.gmra.mrb[4].mxu0 %v709_v46  ;;  %822 = vmatmul.mubr.f32.gmra.mrb[4].mxu1 %v717_v54  ;;  %vm843_vm6 = vcmp.eq.s32.totalorder %v1222_v19, %v841_v21  ;;  %vm845_vm7 = vcmp.eq.s32.totalorder %v1231_v36, %v841_v21 }
  0xe3   :  { %803 = vmatprep.mubr.f32.mxu0 %v712_v1  ;;  %827 = vmatprep.mubr.f32.mxu1 %v720_v0  ;;  %vm856_vm15 = vcmp.eq.s32.totalorder %v1222_v19, %v851_v14  ;;  %vm858_vm1 = vcmp.eq.s32.totalorder %v1231_v36, %v851_v14  ;;  %vm857_vm2 = vcmp.eq.s32.totalorder %v1222_v19, %v855_v16 }
  0xe4   :  { %vm859_vm3 = vcmp.eq.s32.totalorder %v1231_v36, %v855_v16  ;;  %v871_v23 = vsel %vm856_vm15, %v864_v18, 0.0  ;;  %v873_v26 = vsel %vm858_vm1, %v864_v18, 0.0  ;;  %v872_v27 = vsel %vm857_vm2, %v868_v22, 0.0 }
  0xe5   :  { %v874_v32 = vsel %vm859_vm3, %v868_v22, 0.0  ;;  %v886_v35 = vsel %vm842_vm5, %v879_v24, %v871_v23  ;;  %v888_v52 = vsel %vm844_vm4, %v879_v24, %v873_v26  ;;  %v887_v57 = vsel %vm843_vm6, %v883_v25, %v872_v27 }
  0xe6   :  { %804 = vmatmul.mubr.f32.gmra.mrb[6].mxu0 %v711_v2  ;;  %828 = vmatmul.mubr.f32.gmra.mrb[6].mxu1 %v719_v3  ;;  %v889_v30 = vsel %vm845_vm7, %v883_v25, %v874_v32 }
 0x1ad   :  { %v787_v29 = vpop.f32.mrb[0].mxu0  ;;  %v811_v31 = vpop.f32.mrb[0].mxu1 }
 0x1ae   :  { %v789_v33 = vpop.f32.mrb[1].mxu0  ;;  %v813_v34 = vpop.f32.mrb[1].mxu1  ;;  %v890_v28 = vmul.f32 %v886_v35, %v787_v29  ;;  %v926_v47 = vmul.f32 %v886_v35, %v811_v31 }
 0x1af   :  { %v891_v19 = vmul.f32 %v887_v57, %v789_v33  ;;  %v927_v49 = vmul.f32 %v887_v57, %v813_v34 }
 0x1b1   :  { %v793_v37 = vpop.f32.mrb[2].mxu0  ;;  %v817_v39 = vpop.f32.mrb[2].mxu1 }
 0x1b2   :  { %v892_v44 = vmul.f32 %v888_v52, %v793_v37  ;;  %v928_v48 = vmul.f32 %v888_v52, %v817_v39  ;;  %v795_v51 = vpop.f32.mrb[3].mxu0  ;;  %v819_v43 = vpop.f32.mrb[3].mxu1 }
 0x1b3   :  { %v893_v58 = vmul.f32 %v889_v30, %v795_v51  ;;  %v929_v38 = vmul.f32 %v889_v30, %v819_v43 }
 0x1b4   :  { %v894_v36 = vadd.f32 %v892_v44, %v890_v28  ;;  %v930_v59 = vadd.f32 %v928_v48, %v926_v47 }
 0x1b5   :  { %v901_v40 = vadd.f32 %v893_v58, %v891_v19  ;;  %v937_v45 = vadd.f32 %v929_v38, %v927_v49  ;;  %v799_v55 = vpop.f32.mrb[4].mxu0  ;;  %v823_v61 = vpop.f32.mrb[4].mxu1 }
 0x1b6   :  { %v895_v50 = vrot.slane %v894_v36, 4  ;;  %v931_v60 = vrot.slane %v930_v59, 4  ;;  %v801_v56 = vpop.f32.mrb[5].mxu0  ;;  %v825_v53 = vpop.f32.mrb[5].mxu1  ;;  %v908_v0 = vmul.f32 %v886_v35, %v799_v55  ;;  %v944_v4 = vmul.f32 %v886_v35, %v823_v61 }
 0x1b7   :  { %v902_v62 = vrot.slane %v901_v40, 4  ;;  %v938_v63 = vrot.slane %v937_v45, 4  ;;  %v909_v9 = vmul.f32 %v887_v57, %v801_v56  ;;  %v945_v10 = vmul.f32 %v887_v57, %v825_v53 }
 0x1b8   :  { %v896_v46 = vadd.f32 %v895_v50, %v894_v36  ;;  %v932_v54 = vadd.f32 %v931_v60, %v930_v59 }
 0x1b9   :  { %v903_v1 = vadd.f32 %v902_v62, %v901_v40  ;;  %v805_v2 = vpop.f32.mrb[6].mxu0  ;;  %v829_v3 = vpop.f32.mrb[6].mxu1  ;;  %v939_v5 = vadd.f32 %v938_v63, %v937_v45 }
 0x1ba   :  { %v910_v6 = vmul.f32 %v888_v52, %v805_v2  ;;  %v946_v7 = vmul.f32 %v888_v52, %v829_v3  ;;  %v807_v8 = vpop.f32.mrb[7].mxu0  ;;  %v831_v42 = vpop.f32.mrb[7].mxu1  ;;  %v897_v12 = vrot.slane %v896_v46, 2  ;;  %v933_v14 = vrot.slane %v932_v54, 2 }
 0x1bb   :  { %v911_v41 = vmul.f32 %v889_v30, %v807_v8  ;;  %v947_v11 = vmul.f32 %v889_v30, %v831_v42  ;;  %v904_v16 = vrot.slane %v903_v1, 2  ;;  %v940_v18 = vrot.slane %v939_v5, 2 }
 0x1bc   :  { %v912_v13 = vadd.f32 %v910_v6, %v908_v0  ;;  %v948_v15 = vadd.f32 %v946_v7, %v944_v4  ;;  %v898_v25 = vadd.f32 %v897_v12, %v896_v46  ;;  %v934_v27 = vadd.f32 %v933_v14, %v932_v54 }
 0x1bd   :  { %v919_v17 = vadd.f32 %v911_v41, %v909_v9  ;;  %v955_v20 = vadd.f32 %v947_v11, %v945_v10  ;;  %v905_v31 = vadd.f32 %v904_v16, %v903_v1  ;;  %v941_v34 = vadd.f32 %v940_v18, %v939_v5 }
 0x1be   :  { %v913_v21 = vrot.slane %v912_v13, 4  ;;  %v949_v22 = vrot.slane %v948_v15, 4  ;;  %v899_v37 = vrot.slane %v898_v25, 1  ;;  %v935_v47 = vrot.slane %v934_v27, 1 }
 0x1bf   :  { %v920_v24 = vrot.slane %v919_v17, 4  ;;  %v956_v23 = vrot.slane %v955_v20, 4  ;;  %v906_v44 = vrot.slane %v905_v31, 1  ;;  %v942_v43 = vrot.slane %v941_v34, 1 }
 0x1c0   :  { %v914_v26 = vadd.f32 %v913_v21, %v912_v13  ;;  %v950_v29 = vadd.f32 %v949_v22, %v948_v15  ;;  %v900_v36 = vadd.f32 %v899_v37, %v898_v25  ;;  %v936_v40 = vadd.f32 %v935_v47, %v934_v27 }
 0x1c1   :  { %v921_v32 = vadd.f32 %v920_v24, %v919_v17  ;;  %v957_v33 = vadd.f32 %v956_v23, %v955_v20  ;;  %v907_v45 = vadd.f32 %v906_v44, %v905_v31  ;;  %v943_v61 = vadd.f32 %v942_v43, %v941_v34 }
 0x1c2   :  { %v915_v35 = vrot.slane %v914_v26, 2  ;;  %v951_v52 = vrot.slane %v950_v29, 2 }
 0x1c3   :  { %v922_v57 = vrot.slane %v921_v32, 2  ;;  %v958_v30 = vrot.slane %v957_v33, 2 }
 0x1c4   :  { %v916_v39 = vadd.f32 %v915_v35, %v914_v26  ;;  %v952_v28 = vadd.f32 %v951_v52, %v950_v29 }
 0x1c5   :  { %v923_v48 = vadd.f32 %v922_v57, %v921_v32  ;;  %v959_v51 = vadd.f32 %v958_v30, %v957_v33 }
 0x1c6   :  { %v917_v19 = vrot.slane %v916_v39, 1  ;;  %v953_v49 = vrot.slane %v952_v28, 1 }
 0x1c7   :  { %v924_v58 = vrot.slane %v923_v48, 1  ;;  %v960_v38 = vrot.slane %v959_v51, 1 }
 0x1c8   :  { %v918_v59 = vadd.f32 %v917_v19, %v916_v39  ;;  %v954_v50 = vadd.f32 %v953_v49, %v952_v28 }
 0x1c9   :  { %v925_v55 = vadd.f32 %v924_v58, %v923_v48  ;;  %v961_v56 = vadd.f32 %v960_v38, %v959_v51 }
 0x1ca   :  { %v963_v60 = vsel %vm962_vm8, %v900_v36, %v918_v59 }
 0x1cb   :  { %v964_v53 = vsel %vm962_vm8, %v907_v45, %v925_v55  ;;  %v966_v62 = vsel %vm965_vm9, %v963_v60, %v936_v40 }
 0x1cc   :  { %v967_v63 = vsel %vm965_vm9, %v964_v53, %v943_v61  ;;  %v969_v46 = vsel %vm968_vm10, %v966_v62, %v954_v50 }
 0x1cd   :  { %v970_v54 = vsel %vm968_vm10, %v967_v63, %v961_v56 }
 0x1ce   :  { %v973_v1 = vcombine.low %v969_v46, %v970_v54 }
 0x1d0   :  { %975 = vst [vmem:[#allocation7] sm:$0xff] %v973_v1 }
 0x1d1   :  { %1154 = shalt.err (!%p1151_p6)
}
 0x1d2   :  { %s1155_s10 = scalar_lea.hbm %s2381_s2, 128 }
 0x1d3   :  { %p1156_p7 = scmp.ne.s32.totalorder %s2381_s2, %s1155_s10  ;;  %p1159_p8 = scmp.lt.u32.totalorder %s1155_s10, %s2381_s2 }
 0x1d5   :  { %p1161_p9 = pnand %p1159_p8, %p1156_p7 }
 0x1d7   :  { %1164 = shalt.err (!%p1161_p9)
}
 0x1d8   :  { %985 = dma.vmem_to_hbm [thread:$0]  %s983_s6, 128, %s2381_s2, [#allocation4]  }
 0x1d9   :  { %1169 = dma.done.wait [#allocation4], 128  }
 0x1da   :  { %1170 = vsyncadd [#allocation4], 4294967168 }
 0x1db   :  { %989 = vsyncpa [#allocation3], 1 }
 0x1dc   :  { %990 = vsyncpa [#allocation6], 1 }
 0x1dd   :  { %991 = vsyncpa [#allocation4], 1 }

</bundles_post_ra>
